<compile_context>
chip_gen: v5e
topology: v5e:2x2
jax: 0.10.0
libtpu: 0.0.40
codegen_flags: <defaults>
</compile_context>

<pallas_src>
import math

import jax
import jax.numpy as jnp
from jax.experimental import pallas as pl
from jax.experimental.pallas import tpu as pltpu

NUM_CLASSES = 10
FEAT_DIM = 3000              # original module: 10222 * 300 (kernels handle it unchanged)
LIN1 = 64
CONV_FLAT = 4 * 4 * 8        # flattened conv tower width (128)
FC1_DTYPE = jnp.bfloat16     # stream fc1 weights/activations as bf16, accumulate f32
TKH_TARGET = 32 * 1024       # packed-weight rows per grid step (== ~64K logical K/step)


def _round_up(x, m):
    return (x + m - 1) // m * m


def _cdiv(a, b):
    return -(-a // b)


def _num_tensorcores():
    """2 on chips whose second TensorCore is reachable via a 'parallel' grid axis
    (v7x / v4 / v5p); 1 on single-TC chips (v5e / v6e)."""
    try:
        dev = jax.devices()[0]
        if dev.platform != "tpu":
            return 1
        kind = str(getattr(dev, "device_kind", "")).lower()
        if "lite" in kind or "v5e" in kind or "v6e" in kind:
            return 1
        if any(tag in kind for tag in ("v7", "7x", "v4", "v5p")):
            return 2
    except Exception:
        pass
    return 1


# ----------------------- compile-time tiling constants -----------------------

CONV1_KP = _round_up(5 * 5 * 3, 128)     # 75  -> 128
CONV2_KP = _round_up(5 * 5 * 8, 128)     # 200 -> 256

FC1_K_RAW = CONV_FLAT + FEAT_DIM         # torch fc1 in_features

FC1_NSPLIT = _num_tensorcores()
_KH_RAW = _cdiv(FEAT_DIM, 2)             # half of the streamed (feature) K axis
# number of K grid steps: aim at TKH_TARGET packed rows/step, keep >=2 per split
FC1_KSTEPS = max(2 * FC1_NSPLIT,
                 FC1_NSPLIT * _cdiv(_KH_RAW, FC1_NSPLIT * TKH_TARGET))
FC1_TKH = _round_up(_cdiv(_KH_RAW, FC1_KSTEPS), 256)   # packed rows per grid step
FC1_KH_PAD = FC1_KSTEPS * FC1_TKH        # packed-weight rows (zero-pad waste < 1%)
FEAT_PAD = 2 * FC1_KH_PAD                # features zero-padded to this many columns
FC1_KSP = FC1_KSTEPS // FC1_NSPLIT       # K steps per split


def _fc1_vmem_limit(m2):
    """Double-buffered working set (weight tile + packed activation tile) + headroom."""
    rows = _round_up(max(m2, 16), 16)                      # bf16 sublane padding
    step = 2 * (FC1_TKH * 128 * 2) + 2 * (rows * FC1_TKH * 2)
    return int(min(48 * 1024 * 1024, max(16 * 1024 * 1024, 2 * step)))


# ------------------------------ Pallas kernels -------------------------------

def _convT_kernel(w_ref, p_ref, b_ref, o_ref):
    """Y^T[Cout, Mt] = relu(W^T[Cout, Kp] @ P^T[Kp, Mt] + b[Cout, 1]).

    Output last dim = Mt (lane-dense stores); Kp is a multiple of 128.
    """
    y = jnp.dot(w_ref[...], p_ref[...], preferred_element_type=jnp.float32)
    o_ref[...] = jnp.maximum(y + b_ref[...], 0.0)


def conv_relu_T(w_t, p_t, b, *, tm_cap=4096):
    """w_t: [Cout, Kp], p_t: [Kp, M], b: [Cout] -> [Cout, M] f32."""
    cout, kp = w_t.shape
    kp2, M = p_t.shape
    assert kp == kp2
    tm = M
    if M > tm_cap:  # tile M so big batches keep each block comfortably in VMEM
        for t in range(tm_cap, 127, -128):
            if M % t == 0:
                tm = t
                break
    return pl.pallas_call(
        _convT_kernel,
        out_shape=jax.ShapeDtypeStruct((cout, M), jnp.float32),
        grid=(M // tm,),
        in_specs=[
            pl.BlockSpec((cout, kp), lambda i: (0, 0)),
            pl.BlockSpec((kp, tm), lambda i: (0, i)),
            pl.BlockSpec((cout, 1), lambda i: (0, 0)),
        ],
        out_specs=pl.BlockSpec((cout, tm), lambda i: (0, i)),
        compiler_params=pltpu.CompilerParams(
            dimension_semantics=("parallel",)),
    )(w_t, p_t, b.reshape(cout, 1))


def _fc1_fused_kernel(f_ref, w_ref, cf_ref, wc_ref, b1_ref, w2_ref, b2_ref,
                      o_ref, acc_ref):
    """Stream fc1 feature weights; last-K epilogue does conv-flat dot + bias +
    ReLU + fc2 + softmax (NSPLIT == 1 path).

    f_ref:  [2M, TKH] bf16  (rows 0..M-1: first K half, rows M..2M-1: second half)
    w_ref:  [TKH, 128] bf16 (lanes 0:64: first-half weights, 64:128: second half)
    acc_ref:[2M, 128] f32 resident accumulator.
    """
    k = pl.program_id(0)

    @pl.when(k == 0)
    def _():
        acc_ref[...] = jnp.zeros_like(acc_ref)

    acc_ref[...] += jnp.dot(f_ref[...], w_ref[...],
                            preferred_element_type=jnp.float32)

    @pl.when(k == pl.num_programs(0) - 1)
    def _():
        m = cf_ref.shape[0]
        acc = acc_ref[...]
        h = acc[:m, :LIN1] + acc[m:, LIN1:]                 # combine packed K halves
        h = h + jnp.dot(cf_ref[...], wc_ref[...],
                        preferred_element_type=jnp.float32)  # conv-flat contribution
        h = jnp.maximum(h + b1_ref[...], 0.0)                # fc1 bias + ReLU
        logits = jnp.dot(h, w2_ref[...],
                         preferred_element_type=jnp.float32) + b2_ref[...]
        e = jnp.exp(logits - jnp.max(logits, axis=-1, keepdims=True))
        o_ref[...] = e / jnp.sum(e, axis=-1, keepdims=True)


def _fc1_partial_kernel(f_ref, w_ref, o_ref, acc_ref):
    """Split-K partial sums (NSPLIT == 2 path, 'parallel' outer axis)."""
    k = pl.program_id(1)

    @pl.when(k == 0)
    def _():
        acc_ref[...] = jnp.zeros_like(acc_ref)

    acc_ref[...] += jnp.dot(f_ref[...], w_ref[...],
                            preferred_element_type=jnp.float32)

    @pl.when(k == pl.num_programs(1) - 1)
    def _():
        o_ref[0] = acc_ref[...]


def _head_kernel(p_ref, cf_ref, wc_ref, b1_ref, w2_ref, b2_ref, o_ref):
    """Combine split-K partials + conv-flat dot + fc1 bias + ReLU + fc2 + softmax."""
    m = cf_ref.shape[0]
    acc = p_ref[0]
    for s in range(1, p_ref.shape[0]):                       # static python int
        acc = acc + p_ref[s]
    h = acc[:m, :LIN1] + acc[m:, LIN1:]
    h = h + jnp.dot(cf_ref[...], wc_ref[...], preferred_element_type=jnp.float32)
    h = jnp.maximum(h + b1_ref[...], 0.0)
    logits = jnp.dot(h, w2_ref[...], preferred_element_type=jnp.float32) + b2_ref[...]
    e = jnp.exp(logits - jnp.max(logits, axis=-1, keepdims=True))
    o_ref[...] = e / jnp.sum(e, axis=-1, keepdims=True)


# ---------------------------- fc1 kernel wrappers -----------------------------

def fc1_head_fused(feat2, wp, conv_flat, wc, b1, w2, b2):
    m2 = feat2.shape[0]
    m = m2 // 2
    return pl.pallas_call(
        _fc1_fused_kernel,
        out_shape=jax.ShapeDtypeStruct((m, NUM_CLASSES), jnp.float32),
        grid_spec=pltpu.PrefetchScalarGridSpec(
            num_scalar_prefetch=0,
            grid=(FC1_KSTEPS,),
            in_specs=[
                pl.BlockSpec((m2, FC1_TKH), lambda k: (0, k)),
                pl.BlockSpec((FC1_TKH, 128), lambda k: (k, 0)),
                pl.BlockSpec((m, CONV_FLAT), lambda k: (0, 0)),
                pl.BlockSpec((CONV_FLAT, LIN1), lambda k: (0, 0)),
                pl.BlockSpec((1, LIN1), lambda k: (0, 0)),
                pl.BlockSpec((LIN1, NUM_CLASSES), lambda k: (0, 0)),
                pl.BlockSpec((1, NUM_CLASSES), lambda k: (0, 0)),
            ],
            out_specs=pl.BlockSpec((m, NUM_CLASSES), lambda k: (0, 0)),
            scratch_shapes=[pltpu.VMEM((m2, 128), jnp.float32)],
        ),
        compiler_params=pltpu.CompilerParams(
            dimension_semantics=("arbitrary",),
            vmem_limit_bytes=_fc1_vmem_limit(m2)),
    )(feat2, wp, conv_flat, wc, b1, w2, b2)


def fc1_partial(feat2, wp):
    m2 = feat2.shape[0]
    return pl.pallas_call(
        _fc1_partial_kernel,
        out_shape=jax.ShapeDtypeStruct((FC1_NSPLIT, m2, 128), jnp.float32),
        grid_spec=pltpu.PrefetchScalarGridSpec(
            num_scalar_prefetch=0,
            grid=(FC1_NSPLIT, FC1_KSP),
            in_specs=[
                pl.BlockSpec((m2, FC1_TKH), lambda s, k: (0, s * FC1_KSP + k)),
                pl.BlockSpec((FC1_TKH, 128), lambda s, k: (s * FC1_KSP + k, 0)),
            ],
            out_specs=pl.BlockSpec((1, m2, 128), lambda s, k: (s, 0, 0)),
            scratch_shapes=[pltpu.VMEM((m2, 128), jnp.float32)],
        ),
        compiler_params=pltpu.CompilerParams(
            dimension_semantics=("parallel", "arbitrary"),
            vmem_limit_bytes=_fc1_vmem_limit(m2)),
    )(feat2, wp)


def head_combine(partials, conv_flat, wc, b1, w2, b2):
    nsplit, m2, _ = partials.shape
    m = m2 // 2
    return pl.pallas_call(
        _head_kernel,
        out_shape=jax.ShapeDtypeStruct((m, NUM_CLASSES), jnp.float32),
        grid=(1,),
        in_specs=[
            pl.BlockSpec((nsplit, m2, 128), lambda i: (0, 0, 0)),
            pl.BlockSpec((m, CONV_FLAT), lambda i: (0, 0)),
            pl.BlockSpec((CONV_FLAT, LIN1), lambda i: (0, 0)),
            pl.BlockSpec((1, LIN1), lambda i: (0, 0)),
            pl.BlockSpec((LIN1, NUM_CLASSES), lambda i: (0, 0)),
            pl.BlockSpec((1, NUM_CLASSES), lambda i: (0, 0)),
        ],
        out_specs=pl.BlockSpec((m, NUM_CLASSES), lambda i: (0, 0)),
    )(partials, conv_flat, wc, b1, w2, b2)


# --------------------------------- JAX glue ----------------------------------

def im2col_T(x_cnhw, ksize, stride, pad, k_pad):
    """x: [C, N, H, W] -> P^T: [k_pad, N*Ho*Wo] with contraction order (kh, kw, cin)."""
    C, N, H, W = x_cnhw.shape
    Ho = (H + 2 * pad - ksize) // stride + 1
    Wo = (W + 2 * pad - ksize) // stride + 1
    xp = jnp.pad(x_cnhw, ((0, 0), (0, 0), (pad, pad), (pad, pad)))
    taps = []
    for kh in range(ksize):
        for kw in range(ksize):
            taps.append(xp[:, :,
                           kh:kh + stride * (Ho - 1) + 1:stride,
                           kw:kw + stride * (Wo - 1) + 1:stride])
    pt = jnp.stack(taps, axis=0).reshape(ksize * ksize * C, N * Ho * Wo)
    k_raw = ksize * ksize * C
    if k_pad > k_raw:
        pt = jnp.pad(pt, ((0, k_pad - k_raw), (0, 0)))   # zero rows: no effect on result
    return pt, Ho, Wo


def conv_weight_T(w, k_pad):
    """torch [Cout, Cin, KH, KW] -> [Cout, k_pad] with K order (kh, kw, cin)."""
    cout, cin, kh, kw = w.shape
    wt = jnp.transpose(w, (0, 2, 3, 1)).reshape(cout, kh * kw * cin)
    return jnp.pad(wt, ((0, 0), (0, k_pad - kh * kw * cin)))


def maxpool2x2_cnhw(y):
    """[C, N, H, W] -> [C, N, H//2, W//2] (nn.MaxPool2d(2))."""
    C, N, H, W = y.shape
    return jnp.max(y.reshape(C, N, H // 2, 2, W // 2, 2), axis=(3, 5))


def pack_features(features):
    """[N, FEAT_DIM] f32 -> [2N, KH_PAD] bf16: the two halves of the (padded)
    feature axis stacked along rows, matching the lane-dense packed fc1 weight.
    One fused cast/pad/permute copy, done once outside the streamed K loop."""
    n = features.shape[0]
    featp = jnp.pad(features.astype(FC1_DTYPE),
                    ((0, 0), (0, FEAT_PAD - FEAT_DIM)))
    return featp.reshape(n, 2, FC1_KH_PAD).transpose(1, 0, 2).reshape(2 * n, FC1_KH_PAD)


def forward(image_nchw, features, params):
    N = image_nchw.shape[0]

    # conv1 (k=5, s=2, p=2) + ReLU (Pallas); 2x2 pool is cheap XLA glue
    x = jnp.transpose(image_nchw, (1, 0, 2, 3))                  # [C, N, H, W]
    p1, ho1, wo1 = im2col_T(x, 5, 2, 2, CONV1_KP)
    y1 = conv_relu_T(params["w1t"], p1, params["b1"]).reshape(8, N, ho1, wo1)
    y1 = maxpool2x2_cnhw(y1)                                     # [8, N, 16, 16]

    # conv2 + ReLU + pool -> [8, N, 4, 4]
    p2, ho2, wo2 = im2col_T(y1, 5, 2, 2, CONV2_KP)
    y2 = conv_relu_T(params["w2t"], p2, params["b2"]).reshape(8, N, ho2, wo2)
    y2 = maxpool2x2_cnhw(y2)

    # flatten in torch (N, C, H, W) order; stays f32, handled in the head
    conv_flat = jnp.transpose(y2, (1, 0, 2, 3)).reshape(N, CONV_FLAT)

    # dropout is None in the module -> no-op
    feat2 = pack_features(features)                              # [2N, KH_PAD] bf16
    b1r = params["bfc1"].reshape(1, LIN1)
    b2r = params["bfc2"].reshape(1, NUM_CLASSES)

    if FC1_NSPLIT == 1:
        # single TensorCore: fc1 stream + bias + ReLU + fc2 + softmax in one kernel
        return fc1_head_fused(feat2, params["wp"], conv_flat, params["wc"],
                              b1r, params["wfc2"], b2r)
    # two TensorCores: split-K 'parallel' stream + tiny combine/head kernel
    partials = fc1_partial(feat2, params["wp"])
    return head_combine(partials, conv_flat, params["wc"], b1r, params["wfc2"], b2r)


def init_params(key):
    ks = jax.random.split(key, 8)

    def u(k, shape, fan_in):
        bound = 1.0 / math.sqrt(float(fan_in))
        return jax.random.uniform(k, shape, jnp.float32, -bound, bound)

    w1 = u(ks[0], (8, 3, 5, 5), 3 * 25)
    b1 = u(ks[1], (8,), 3 * 25)
    w2 = u(ks[2], (8, 8, 5, 5), 8 * 25)
    b2 = u(ks[3], (8,), 8 * 25)
    wfc1 = u(ks[4], (FC1_K_RAW, LIN1), FC1_K_RAW)     # == torch fc1.weight.T
    bfc1 = u(ks[5], (LIN1,), FC1_K_RAW)
    wfc2 = u(ks[6], (LIN1, NUM_CLASSES), LIN1)
    bfc2 = u(ks[7], (NUM_CLASSES,), LIN1)

    # lane-dense packing of the streamed (feature) part of the fc1 weight:
    # rows [0, KH_PAD) -> lanes 0:64, rows [KH_PAD, 2*KH_PAD) -> lanes 64:128.
    wf = jnp.pad(wfc1[CONV_FLAT:], ((0, FEAT_PAD - FEAT_DIM), (0, 0)))
    wp = jnp.concatenate([wf[:FC1_KH_PAD], wf[FC1_KH_PAD:]], axis=1).astype(FC1_DTYPE)

    params = {
        "w1t": conv_weight_T(w1, CONV1_KP), "b1": b1,
        "w2t": conv_weight_T(w2, CONV2_KP), "b2": b2,
        "wc": wfc1[:CONV_FLAT],            # [128, 64] f32, folded into the head
        "wp": wp,                          # [KH_PAD, 128] bf16, HBM-streamed
        "bfc1": bfc1, "wfc2": wfc2, "bfc2": bfc2,
    }
    raw = {"w1": w1, "b1": b1, "w2": w2, "b2": b2,
           "wfc1": wfc1, "bfc1": bfc1, "wfc2": wfc2, "bfc2": bfc2}
    return params, raw


# ------------------------- pure-JAX f32 reference -----------------------------

def _maxpool2x2_nchw(y):
    n, c, h, w = y.shape
    return jnp.max(y.reshape(n, c, h // 2, 2, w // 2, 2), axis=(3, 5))


def reference_forward(image, features, raw):
    def conv(x, w, b):
        y = jax.lax.conv_general_dilated(
            x, w, window_strides=(2, 2), padding=[(2, 2), (2, 2)],
            dimension_numbers=("NCHW", "OIHW", "NCHW"))
        return y + b.reshape(1, -1, 1, 1)

    y = _maxpool2x2_nchw(jnp.maximum(conv(image, raw["w1"], raw["b1"]), 0.0))
    y = _maxpool2x2_nchw(jnp.maximum(conv(y, raw["w2"], raw["b2"]), 0.0))
    z = jnp.concatenate([y.reshape(y.shape[0], -1), features], axis=1)
    h = jnp.maximum(z @ raw["wfc1"] + raw["bfc1"], 0.0)
    logits = h @ raw["wfc2"] + raw["bfc2"]
    return jax.nn.softmax(logits, axis=1)


if __name__ == "__main__":
    key = jax.random.PRNGKey(0)
    kp, ki, kf = jax.random.split(key, 3)
    params, raw = init_params(kp)
    image = jax.random.normal(ki, (2, 3, 64, 64), jnp.float32)
    features = jax.random.normal(kf, (2, FEAT_DIM), jnp.float32)

    out = jax.jit(forward)(image, features, params)
    out = jax.block_until_ready(out)

    assert out.shape == (2, NUM_CLASSES)
    assert bool(jnp.all(jnp.isfinite(out)))
    assert bool(jnp.allclose(jnp.sum(out, axis=1), 1.0, atol=1e-5))

    # bf16 streaming of the fc1 weight drifts slightly from the f32 reference;
    # well inside this tolerance at the test FEAT_DIM.
    ref = reference_forward(image, features, raw)
    assert bool(jnp.allclose(out, ref, atol=1e-2)), float(jnp.max(jnp.abs(out - ref)))

    print("KERNEL_OK")
</pallas_src>

<mosaic_0001>
module attributes {stable_mosaic.version = 11 : i64} {
  func.func @_convT_kernel(%arg0: i32, %arg1: memref<8x128xf32, #tpu.memory_space<vmem>>, %arg2: memref<128x2048xf32, #tpu.memory_space<vmem>>, %arg3: memref<8x1xf32, #tpu.memory_space<vmem>>, %arg4: memref<8x2048xf32, #tpu.memory_space<vmem>>) attributes {dimension_semantics = [#tpu.dimension_semantics<parallel>], iteration_bounds = array<i64: 1>, scalar_prefetch = 0 : i64, scratch_operands = 0 : i64, tpu.core_type = #tpu.core_type<tc>, window_params = [{pipeline_mode = #tpu.pipeline_mode<synchronous>, transform_indices = @transform_0, window_bounds = array<i64: 8, 128>}, {transform_indices = @transform_1, window_bounds = array<i64: 128, 2048>}, {pipeline_mode = #tpu.pipeline_mode<synchronous>, transform_indices = @transform_2, window_bounds = array<i64: 8, 1>}, {transform_indices = @transform_3, window_bounds = array<i64: 8, 2048>}]} {
    %c0 = arith.constant 0 : index
    %c0_0 = arith.constant 0 : index
    %0 = vector.load %arg1[%c0, %c0_0] : memref<8x128xf32, #tpu.memory_space<vmem>>, vector<8x128xf32>
    %c0_1 = arith.constant 0 : index
    %c0_2 = arith.constant 0 : index
    %1 = vector.load %arg2[%c0_1, %c0_2] : memref<128x2048xf32, #tpu.memory_space<vmem>>, vector<128x2048xf32>
    %cst = arith.constant dense<0.000000e+00> : vector<8x2048xf32>
    %2 = tpu.matmul %0, %1, %cst {dimension_numbers = #tpu.dot_dimension_numbers<[1], [0], [0], [1], [0, 0, 1, 1], [], []>} : vector<8x128xf32>, vector<128x2048xf32>, vector<8x2048xf32> -> vector<8x2048xf32>
    %c0_3 = arith.constant 0 : index
    %c0_4 = arith.constant 0 : index
    %3 = vector.load %arg3[%c0_3, %c0_4] : memref<8x1xf32, #tpu.memory_space<vmem>>, vector<8x1xf32>
    %4 = vector.broadcast %3 : vector<8x1xf32> to vector<8x2048xf32>
    %5 = arith.addf %2, %4 : vector<8x2048xf32>
    %cst_5 = arith.constant 0.000000e+00 : f32
    %6 = vector.broadcast %cst_5 : f32 to vector<8x2048xf32>
    %7 = arith.maximumf %5, %6 : vector<8x2048xf32>
    %c0_6 = arith.constant 0 : index
    %c0_7 = arith.constant 0 : index
    %8 = vector.load %arg4[%c0_6, %c0_7] : memref<8x2048xf32, #tpu.memory_space<vmem>>, vector<8x2048xf32>
    tpu.vector_store %arg4[%c0_6, %c0_7], %7 {strides = array<i32>} : memref<8x2048xf32, #tpu.memory_space<vmem>>, vector<8x2048xf32>,
    return
  }
  func.func @transform_0(%arg0: i32) -> (i32, i32) {
    %c0_i32 = arith.constant 0 : i32
    %c0_i32_0 = arith.constant 0 : i32
    %c0_i32_1 = arith.constant 0 : i32
    return %c0_i32, %c0_i32_0 : i32, i32
  }
  func.func @transform_1(%arg0: i32) -> (i32, i32) {
    %c0_i32 = arith.constant 0 : i32
    %c0_i32_0 = arith.constant 0 : i32
    return %c0_i32, %arg0 : i32, i32
  }
  func.func @transform_2(%arg0: i32) -> (i32, i32) {
    %c0_i32 = arith.constant 0 : i32
    %c0_i32_0 = arith.constant 0 : i32
    %c0_i32_1 = arith.constant 0 : i32
    return %c0_i32, %c0_i32_0 : i32, i32
  }
  func.func @transform_3(%arg0: i32) -> (i32, i32) {
    %c0_i32 = arith.constant 0 : i32
    %c0_i32_0 = arith.constant 0 : i32
    return %c0_i32, %arg0 : i32, i32
  }
}

module attributes {stable_mosaic.version = 11 : i64} {
  func.func @_convT_kernel(%arg0: i32, %arg1: memref<8x256xf32, #tpu.memory_space<vmem>>, %arg2: memref<256x128xf32, #tpu.memory_space<vmem>>, %arg3: memref<8x1xf32, #tpu.memory_space<vmem>>, %arg4: memref<8x128xf32, #tpu.memory_space<vmem>>) attributes {dimension_semantics = [#tpu.dimension_semantics<parallel>], iteration_bounds = array<i64: 1>, scalar_prefetch = 0 : i64, scratch_operands = 0 : i64, tpu.core_type = #tpu.core_type<tc>, window_params = [{pipeline_mode = #tpu.pipeline_mode<synchronous>, transform_indices = @transform_0, window_bounds = array<i64: 8, 256>}, {transform_indices = @transform_1, window_bounds = array<i64: 256, 128>}, {pipeline_mode = #tpu.pipeline_mode<synchronous>, transform_indices = @transform_2, window_bounds = array<i64: 8, 1>}, {transform_indices = @transform_3, window_bounds = array<i64: 8, 128>}]} {
    %c0 = arith.constant 0 : index
    %c0_0 = arith.constant 0 : index
    %0 = vector.load %arg1[%c0, %c0_0] : memref<8x256xf32, #tpu.memory_space<vmem>>, vector<8x256xf32>
    %c0_1 = arith.constant 0 : index
    %c0_2 = arith.constant 0 : index
    %1 = vector.load %arg2[%c0_1, %c0_2] : memref<256x128xf32, #tpu.memory_space<vmem>>, vector<256x128xf32>
    %cst = arith.constant dense<0.000000e+00> : vector<8x128xf32>
    %2 = tpu.matmul %0, %1, %cst {dimension_numbers = #tpu.dot_dimension_numbers<[1], [0], [0], [1], [0, 0, 1, 1], [], []>} : vector<8x256xf32>, vector<256x128xf32>, vector<8x128xf32> -> vector<8x128xf32>
    %c0_3 = arith.constant 0 : index
    %c0_4 = arith.constant 0 : index
    %3 = vector.load %arg3[%c0_3, %c0_4] : memref<8x1xf32, #tpu.memory_space<vmem>>, vector<8x1xf32>
    %4 = vector.broadcast %3 : vector<8x1xf32> to vector<8x128xf32>
    %5 = arith.addf %2, %4 : vector<8x128xf32>
    %cst_5 = arith.constant 0.000000e+00 : f32
    %6 = vector.broadcast %cst_5 : f32 to vector<8x128xf32>
    %7 = arith.maximumf %5, %6 : vector<8x128xf32>
    %c0_6 = arith.constant 0 : index
    %c0_7 = arith.constant 0 : index
    %8 = vector.load %arg4[%c0_6, %c0_7] : memref<8x128xf32, #tpu.memory_space<vmem>>, vector<8x128xf32>
    tpu.vector_store %arg4[%c0_6, %c0_7], %7 {strides = array<i32>} : memref<8x128xf32, #tpu.memory_space<vmem>>, vector<8x128xf32>,
    return
  }
  func.func @transform_0(%arg0: i32) -> (i32, i32) {
    %c0_i32 = arith.constant 0 : i32
    %c0_i32_0 = arith.constant 0 : i32
    %c0_i32_1 = arith.constant 0 : i32
    return %c0_i32, %c0_i32_0 : i32, i32
  }
  func.func @transform_1(%arg0: i32) -> (i32, i32) {
    %c0_i32 = arith.constant 0 : i32
    %c0_i32_0 = arith.constant 0 : i32
    return %c0_i32, %arg0 : i32, i32
  }
  func.func @transform_2(%arg0: i32) -> (i32, i32) {
    %c0_i32 = arith.constant 0 : i32
    %c0_i32_0 = arith.constant 0 : i32
    %c0_i32_1 = arith.constant 0 : i32
    return %c0_i32, %c0_i32_0 : i32, i32
  }
  func.func @transform_3(%arg0: i32) -> (i32, i32) {
    %c0_i32 = arith.constant 0 : i32
    %c0_i32_0 = arith.constant 0 : i32
    return %c0_i32, %arg0 : i32, i32
  }
}

module attributes {stable_mosaic.version = 11 : i64} {
  func.func @_fc1_fused_kernel(%arg0: i32, %arg1: memref<4x768xbf16, #tpu.memory_space<vmem>>, %arg2: memref<768x128xbf16, #tpu.memory_space<vmem>>, %arg3: memref<2x128xf32, #tpu.memory_space<vmem>>, %arg4: memref<128x64xf32, #tpu.memory_space<vmem>>, %arg5: memref<1x64xf32, #tpu.memory_space<vmem>>, %arg6: memref<64x10xf32, #tpu.memory_space<vmem>>, %arg7: memref<1x10xf32, #tpu.memory_space<vmem>>, %arg8: memref<2x10xf32, #tpu.memory_space<vmem>>, %arg9: memref<4x128xf32, #tpu.memory_space<vmem>>) attributes {dimension_semantics = [#tpu.dimension_semantics<arbitrary>], iteration_bounds = array<i64: 2>, scalar_prefetch = 0 : i64, scratch_operands = 1 : i64, tpu.core_type = #tpu.core_type<tc>, window_params = [{transform_indices = @transform_0, window_bounds = array<i64: 4, 768>}, {transform_indices = @transform_1, window_bounds = array<i64: 768, 128>}, {pipeline_mode = #tpu.pipeline_mode<synchronous>, transform_indices = @transform_2, window_bounds = array<i64: 2, 128>}, {pipeline_mode = #tpu.pipeline_mode<synchronous>, transform_indices = @transform_3, window_bounds = array<i64: 128, 64>}, {pipeline_mode = #tpu.pipeline_mode<synchronous>, transform_indices = @transform_4, window_bounds = array<i64: 1, 64>}, {pipeline_mode = #tpu.pipeline_mode<synchronous>, transform_indices = @transform_5, window_bounds = array<i64: 64, 10>}, {pipeline_mode = #tpu.pipeline_mode<synchronous>, transform_indices = @transform_6, window_bounds = array<i64: 1, 10>}, {pipeline_mode = #tpu.pipeline_mode<synchronous>, transform_indices = @transform_7, window_bounds = array<i64: 2, 10>}]} {
    %c0_i32 = arith.constant 0 : i32
    %0 = arith.cmpi eq, %arg0, %c0_i32 : i32
    %1 = arith.extui %0 : i1 to i32
    %c0_i32_0 = arith.constant 0 : i32
    %2 = arith.cmpi ne, %1, %c0_i32_0 : i32
    scf.if %2 {
      %cst_9 = arith.constant 0.000000e+00 : f32
      %12 = vector.broadcast %cst_9 : f32 to vector<4x128xf32>
      %c0_10 = arith.constant 0 : index
      %c0_11 = arith.constant 0 : index
      %13 = vector.load %arg9[%c0_10, %c0_11] : memref<4x128xf32, #tpu.memory_space<vmem>>, vector<4x128xf32>
      tpu.vector_store %arg9[%c0_10, %c0_11], %12 {strides = array<i32>} : memref<4x128xf32, #tpu.memory_space<vmem>>, vector<4x128xf32>,
    } else {
    }
    %c0 = arith.constant 0 : index
    %c0_1 = arith.constant 0 : index
    %3 = vector.load %arg9[%c0, %c0_1] : memref<4x128xf32, #tpu.memory_space<vmem>>, vector<4x128xf32>
    %c0_2 = arith.constant 0 : index
    %c0_3 = arith.constant 0 : index
    %4 = vector.load %arg1[%c0_2, %c0_3] : memref<4x768xbf16, #tpu.memory_space<vmem>>, vector<4x768xbf16>
    %c0_4 = arith.constant 0 : index
    %c0_5 = arith.constant 0 : index
    %5 = vector.load %arg2[%c0_4, %c0_5] : memref<768x128xbf16, #tpu.memory_space<vmem>>, vector<768x128xbf16>
    %cst = arith.constant dense<0.000000e+00> : vector<4x128xf32>
    %6 = tpu.matmul %4, %5, %cst {dimension_numbers = #tpu.dot_dimension_numbers<[1], [0], [0], [1], [0, 0, 1, 1], [], []>} : vector<4x768xbf16>, vector<768x128xbf16>, vector<4x128xf32> -> vector<4x128xf32>
    %7 = arith.addf %3, %6 : vector<4x128xf32>
    %c0_6 = arith.constant 0 : index
    %c0_7 = arith.constant 0 : index
    %8 = vector.load %arg9[%c0_6, %c0_7] : memref<4x128xf32, #tpu.memory_space<vmem>>, vector<4x128xf32>
    tpu.vector_store %arg9[%c0_6, %c0_7], %7 {strides = array<i32>} : memref<4x128xf32, #tpu.memory_space<vmem>>, vector<4x128xf32>,
    %c1_i32 = arith.constant 1 : i32
    %9 = arith.cmpi eq, %arg0, %c1_i32 : i32
    %10 = arith.extui %9 : i1 to i32
    %c0_i32_8 = arith.constant 0 : i32
    %11 = arith.cmpi ne, %10, %c0_i32_8 : i32
    scf.if %11 {
      %c0_9 = arith.constant 0 : index
      %c0_10 = arith.constant 0 : index
      %12 = vector.load %arg9[%c0_9, %c0_10] : memref<4x128xf32, #tpu.memory_space<vmem>>, vector<4x128xf32>
      %13 = vector.extract_strided_slice %12 {offsets = [0, 0], sizes = [2, 64], strides = [1, 1]} : vector<4x128xf32> to vector<2x64xf32>
      %14 = vector.extract_strided_slice %12 {offsets = [2, 64], sizes = [2, 64], strides = [1, 1]} : vector<4x128xf32> to vector<2x64xf32>
      %15 = arith.addf %13, %14 : vector<2x64xf32>
      %c0_11 = arith.constant 0 : index
      %c0_12 = arith.constant 0 : index
      %16 = vector.load %arg3[%c0_11, %c0_12] : memref<2x128xf32, #tpu.memory_space<vmem>>, vector<2x128xf32>
      %c0_13 = arith.constant 0 : index
      %c0_14 = arith.constant 0 : index
      %17 = vector.load %arg4[%c0_13, %c0_14] : memref<128x64xf32, #tpu.memory_space<vmem>>, vector<128x64xf32>
      %cst_15 = arith.constant dense<0.000000e+00> : vector<2x64xf32>
      %18 = tpu.matmul %16, %17, %cst_15 {dimension_numbers = #tpu.dot_dimension_numbers<[1], [0], [0], [1], [0, 0, 1, 1], [], []>} : vector<2x128xf32>, vector<128x64xf32>, vector<2x64xf32> -> vector<2x64xf32>
      %19 = arith.addf %15, %18 : vector<2x64xf32>
      %c0_16 = arith.constant 0 : index
      %c0_17 = arith.constant 0 : index
      %20 = vector.load %arg5[%c0_16, %c0_17] : memref<1x64xf32, #tpu.memory_space<vmem>>, vector<1x64xf32>
      %21 = vector.broadcast %20 : vector<1x64xf32> to vector<2x64xf32>
      %22 = arith.addf %19, %21 : vector<2x64xf32>
      %cst_18 = arith.constant 0.000000e+00 : f32
      %23 = vector.broadcast %cst_18 : f32 to vector<2x64xf32>
      %24 = arith.maximumf %22, %23 : vector<2x64xf32>
      %c0_19 = arith.constant 0 : index
      %c0_20 = arith.constant 0 : index
      %25 = vector.load %arg6[%c0_19, %c0_20] : memref<64x10xf32, #tpu.memory_space<vmem>>, vector<64x10xf32>
      %cst_21 = arith.constant dense<0.000000e+00> : vector<2x10xf32>
      %26 = tpu.matmul %24, %25, %cst_21 {dimension_numbers = #tpu.dot_dimension_numbers<[1], [0], [0], [1], [0, 0, 1, 1], [], []>} : vector<2x64xf32>, vector<64x10xf32>, vector<2x10xf32> -> vector<2x10xf32>
      %c0_22 = arith.constant 0 : index
      %c0_23 = arith.constant 0 : index
      %27 = vector.load %arg7[%c0_22, %c0_23] : memref<1x10xf32, #tpu.memory_space<vmem>>, vector<1x10xf32>
      %28 = vector.broadcast %27 : vector<1x10xf32> to vector<2x10xf32>
      %29 = arith.addf %26, %28 : vector<2x10xf32>
      %cst_24 = arith.constant dense<0xFF800000> : vector<2xf32>
      %30 = vector.multi_reduction <maximumf>, %29, %cst_24 [1] : vector<2x10xf32> to vector<2xf32>
      %31 = vector.shape_cast %30 : vector<2xf32> to vector<2x1xf32>
      %32 = vector.broadcast %31 : vector<2x1xf32> to vector<2x10xf32>
      %33 = arith.subf %29, %32 : vector<2x10xf32>
      %34 = math.exp %33 : vector<2x10xf32>
      %cst_25 = arith.constant dense<0.000000e+00> : vector<2xf32>
      %35 = vector.multi_reduction <add>, %34, %cst_25 [1] : vector<2x10xf32> to vector<2xf32>
      %36 = vector.shape_cast %35 : vector<2xf32> to vector<2x1xf32>
      %37 = vector.broadcast %36 : vector<2x1xf32> to vector<2x10xf32>
      %38 = arith.divf %34, %37 : vector<2x10xf32>
      %c0_26 = arith.constant 0 : index
      %c0_27 = arith.constant 0 : index
      %39 = vector.load %arg8[%c0_26, %c0_27] : memref<2x10xf32, #tpu.memory_space<vmem>>, vector<2x10xf32>
      tpu.vector_store %arg8[%c0_26, %c0_27], %38 {strides = array<i32>} : memref<2x10xf32, #tpu.memory_space<vmem>>, vector<2x10xf32>,
    } else {
    }
    return
  }
  func.func @transform_0(%arg0: i32) -> (i32, i32) {
    %c0_i32 = arith.constant 0 : i32
    %c0_i32_0 = arith.constant 0 : i32
    return %c0_i32, %arg0 : i32, i32
  }
  func.func @transform_1(%arg0: i32) -> (i32, i32) {
    %c0_i32 = arith.constant 0 : i32
    %c0_i32_0 = arith.constant 0 : i32
    return %arg0, %c0_i32 : i32, i32
  }
  func.func @transform_2(%arg0: i32) -> (i32, i32) {
    %c0_i32 = arith.constant 0 : i32
    %c0_i32_0 = arith.constant 0 : i32
    %c0_i32_1 = arith.constant 0 : i32
    return %c0_i32, %c0_i32_0 : i32, i32
  }
  func.func @transform_3(%arg0: i32) -> (i32, i32) {
    %c0_i32 = arith.constant 0 : i32
    %c0_i32_0 = arith.constant 0 : i32
    %c0_i32_1 = arith.constant 0 : i32
    return %c0_i32, %c0_i32_0 : i32, i32
  }
  func.func @transform_4(%arg0: i32) -> (i32, i32) {
    %c0_i32 = arith.constant 0 : i32
    %c0_i32_0 = arith.constant 0 : i32
    %c0_i32_1 = arith.constant 0 : i32
    return %c0_i32, %c0_i32_0 : i32, i32
  }
  func.func @transform_5(%arg0: i32) -> (i32, i32) {
    %c0_i32 = arith.constant 0 : i32
    %c0_i32_0 = arith.constant 0 : i32
    %c0_i32_1 = arith.constant 0 : i32
    return %c0_i32, %c0_i32_0 : i32, i32
  }
  func.func @transform_6(%arg0: i32) -> (i32, i32) {
    %c0_i32 = arith.constant 0 : i32
    %c0_i32_0 = arith.constant 0 : i32
    %c0_i32_1 = arith.constant 0 : i32
    return %c0_i32, %c0_i32_0 : i32, i32
  }
  func.func @transform_7(%arg0: i32) -> (i32, i32) {
    %c0_i32 = arith.constant 0 : i32
    %c0_i32_0 = arith.constant 0 : i32
    %c0_i32_1 = arith.constant 0 : i32
    return %c0_i32, %c0_i32_0 : i32, i32
  }
}

</mosaic_0001>

<bundles_post_ra>
// kernel: forward.3
= control target key start
LH: loop header
LB: loop body
LE: loop exit
PB: predicated region body
PF: predicated region fallthrough
CT: control target
= control target key end

     0   :  { %s1496_s1 = inlined_call_operand.vmem [shape: f32[128,2048], index: 1, kind: input, shape index: {}]   ;;  %s1497_s0 = inlined_call_operand.vmem [shape: f32[8,128], index: 0, kind: input, shape index: {}]   ;;  %s1498_s2 = inlined_call_operand.vmem [shape: f32[8,1], index: 2, kind: input, shape index: {}]   ;;  %s1499_s3 = inlined_call_operand.vmem [shape: f32[8,2048], index: 3, kind: output, shape index: {}]  }
   0x1   :  { %v257_v0 = vld [vmem:[%s1496_s1 + $0x790] sm:$0xff]  ;;  %v258_v1 = vld [vmem:[%s1496_s1 + $0x798] sm:$0xff]  ;;  %v255_v6 = vld [vmem:[%s1496_s1 + $0x780] sm:$0xff] }
   0x2   :  { %v241_v2 = vld [vmem:[%s1496_s1 + $0x710] sm:$0xff]  ;;  %317 = vmatpush.msra.mxu2 %v257_v0  ;;  %337 = vmatpush.msra.mxu3 %v258_v1  ;;  %v242_v3 = vld [vmem:[%s1496_s1 + $0x718] sm:$0xff]  ;;  %v256_v7 = vld [vmem:[%s1496_s1 + $0x788] sm:$0xff] }
   0x3   :  { %v225_v4 = vld [vmem:[%s1496_s1 + $0x690] sm:$0xff]  ;;  %v226_v5 = vld [vmem:[%s1496_s1 + $0x698] sm:$0xff]  ;;  %v239_v8 = vld [vmem:[%s1496_s1 + $0x700] sm:$0xff]  ;;  %277 = vmatpush.msra.mxu0 %v255_v6  ;;  %297 = vmatpush.msra.mxu1 %v256_v7 }
   0x4   :  { %318 = vmatpush.msra.mxu2 %v241_v2  ;;  %338 = vmatpush.msra.mxu3 %v242_v3  ;;  %v240_v9 = vld [vmem:[%s1496_s1 + $0x708] sm:$0xff]  ;;  %v209_v10 = vld [vmem:[%s1496_s1 + $0x610] sm:$0xff]  ;;  %v210_v11 = vld [vmem:[%s1496_s1 + $0x618] sm:$0xff] }
   0x5   :  { %v223_v12 = vld [vmem:[%s1496_s1 + $0x680] sm:$0xff]  ;;  %v224_v13 = vld [vmem:[%s1496_s1 + $0x688] sm:$0xff]  ;;  %278 = vmatpush.msra.mxu0 %v239_v8  ;;  %298 = vmatpush.msra.mxu1 %v240_v9  ;;  %v193_v14 = vld [vmem:[%s1496_s1 + $0x590] sm:$0xff] }
   0x6   :  { %319 = vmatpush.msra.mxu2 %v225_v4  ;;  %339 = vmatpush.msra.mxu3 %v226_v5  ;;  %v194_v15 = vld [vmem:[%s1496_s1 + $0x598] sm:$0xff]  ;;  %v207_v16 = vld [vmem:[%s1496_s1 + $0x600] sm:$0xff]  ;;  %v208_v17 = vld [vmem:[%s1496_s1 + $0x608] sm:$0xff] }
   0x7   :  { %279 = vmatpush.msra.mxu0 %v223_v12  ;;  %299 = vmatpush.msra.mxu1 %v224_v13  ;;  %v177_v18 = vld [vmem:[%s1496_s1 + $0x510] sm:$0xff]  ;;  %v178_v19 = vld [vmem:[%s1496_s1 + $0x518] sm:$0xff]  ;;  %v191_v20 = vld [vmem:[%s1496_s1 + $0x580] sm:$0xff] }
   0x8   :  { %320 = vmatpush.msra.mxu2 %v209_v10  ;;  %340 = vmatpush.msra.mxu3 %v210_v11  ;;  %v192_v21 = vld [vmem:[%s1496_s1 + $0x588] sm:$0xff]  ;;  %v161_v22 = vld [vmem:[%s1496_s1 + $0x490] sm:$0xff]  ;;  %v162_v23 = vld [vmem:[%s1496_s1 + $0x498] sm:$0xff] }
   0x9   :  { %280 = vmatpush.msra.mxu0 %v207_v16  ;;  %300 = vmatpush.msra.mxu1 %v208_v17  ;;  %v175_v24 = vld [vmem:[%s1496_s1 + $0x500] sm:$0xff]  ;;  %v176_v25 = vld [vmem:[%s1496_s1 + $0x508] sm:$0xff]  ;;  %v145_v26 = vld [vmem:[%s1496_s1 + $0x410] sm:$0xff] }
   0xa   :  { %321 = vmatpush.msra.mxu2 %v193_v14  ;;  %341 = vmatpush.msra.mxu3 %v194_v15  ;;  %v146_v27 = vld [vmem:[%s1496_s1 + $0x418] sm:$0xff]  ;;  %v159_v28 = vld [vmem:[%s1496_s1 + $0x480] sm:$0xff]  ;;  %v160_v29 = vld [vmem:[%s1496_s1 + $0x488] sm:$0xff] }
   0xb   :  { %281 = vmatpush.msra.mxu0 %v191_v20  ;;  %301 = vmatpush.msra.mxu1 %v192_v21  ;;  %v129_v30 = vld [vmem:[%s1496_s1 + $0x390] sm:$0xff]  ;;  %v130_v31 = vld [vmem:[%s1496_s1 + $0x398] sm:$0xff]  ;;  %v143_v32 = vld [vmem:[%s1496_s1 + $0x400] sm:$0xff] }
   0xc   :  { %322 = vmatpush.msra.mxu2 %v177_v18  ;;  %342 = vmatpush.msra.mxu3 %v178_v19  ;;  %v144_v33 = vld [vmem:[%s1496_s1 + $0x408] sm:$0xff]  ;;  %v113_v34 = vld [vmem:[%s1496_s1 + $0x310] sm:$0xff]  ;;  %v114_v35 = vld [vmem:[%s1496_s1 + $0x318] sm:$0xff] }
   0xd   :  { %282 = vmatpush.msra.mxu0 %v175_v24  ;;  %302 = vmatpush.msra.mxu1 %v176_v25  ;;  %v127_v36 = vld [vmem:[%s1496_s1 + $0x380] sm:$0xff]  ;;  %v128_v37 = vld [vmem:[%s1496_s1 + $0x388] sm:$0xff]  ;;  %v97_v38 = vld [vmem:[%s1496_s1 + $0x290] sm:$0xff] }
   0xe   :  { %323 = vmatpush.msra.mxu2 %v161_v22  ;;  %343 = vmatpush.msra.mxu3 %v162_v23  ;;  %v98_v39 = vld [vmem:[%s1496_s1 + $0x298] sm:$0xff]  ;;  %v111_v40 = vld [vmem:[%s1496_s1 + $0x300] sm:$0xff]  ;;  %v112_v41 = vld [vmem:[%s1496_s1 + $0x308] sm:$0xff] }
   0xf   :  { %283 = vmatpush.msra.mxu0 %v159_v28  ;;  %303 = vmatpush.msra.mxu1 %v160_v29  ;;  %v81_v42 = vld [vmem:[%s1496_s1 + $0x210] sm:$0xff]  ;;  %v82_v43 = vld [vmem:[%s1496_s1 + $0x218] sm:$0xff]  ;;  %v95_v44 = vld [vmem:[%s1496_s1 + $0x280] sm:$0xff] }
  0x10   :  { %324 = vmatpush.msra.mxu2 %v145_v26  ;;  %344 = vmatpush.msra.mxu3 %v146_v27  ;;  %v96_v45 = vld [vmem:[%s1496_s1 + $0x288] sm:$0xff]  ;;  %v65_v46 = vld [vmem:[%s1496_s1 + $0x190] sm:$0xff]  ;;  %v66_v47 = vld [vmem:[%s1496_s1 + $0x198] sm:$0xff] }
  0x11   :  { %284 = vmatpush.msra.mxu0 %v143_v32  ;;  %304 = vmatpush.msra.mxu1 %v144_v33  ;;  %v79_v48 = vld [vmem:[%s1496_s1 + $0x200] sm:$0xff]  ;;  %v80_v49 = vld [vmem:[%s1496_s1 + $0x208] sm:$0xff]  ;;  %v49_v50 = vld [vmem:[%s1496_s1 + $0x110] sm:$0xff] }
  0x12   :  { %325 = vmatpush.msra.mxu2 %v129_v30  ;;  %345 = vmatpush.msra.mxu3 %v130_v31  ;;  %v50_v51 = vld [vmem:[%s1496_s1 + $0x118] sm:$0xff]  ;;  %v63_v52 = vld [vmem:[%s1496_s1 + $0x180] sm:$0xff]  ;;  %v64_v53 = vld [vmem:[%s1496_s1 + $0x188] sm:$0xff] }
  0x13   :  { %285 = vmatpush.msra.mxu0 %v127_v36  ;;  %305 = vmatpush.msra.mxu1 %v128_v37  ;;  %v33_v54 = vld [vmem:[%s1496_s1 + $0x90] sm:$0xff]  ;;  %v34_v55 = vld [vmem:[%s1496_s1 + $0x98] sm:$0xff]  ;;  %v47_v56 = vld [vmem:[%s1496_s1 + $0x100] sm:$0xff] }
  0x14   :  { %326 = vmatpush.msra.mxu2 %v113_v34  ;;  %346 = vmatpush.msra.mxu3 %v114_v35  ;;  %v48_v57 = vld [vmem:[%s1496_s1 + $0x108] sm:$0xff]  ;;  %v17_v58 = vld [vmem:[%s1496_s1 + $0x10] sm:$0xff]  ;;  %v18_v59 = vld [vmem:[%s1496_s1 + $0x18] sm:$0xff] }
  0x15   :  { %286 = vmatpush.msra.mxu0 %v111_v40  ;;  %306 = vmatpush.msra.mxu1 %v112_v41  ;;  %v261_v60 = vld [vmem:[%s1496_s1 + $0x7b0] sm:$0xff]  ;;  %v262_v61 = vld [vmem:[%s1496_s1 + $0x7b8] sm:$0xff]  ;;  %v31_v62 = vld [vmem:[%s1496_s1 + $0x80] sm:$0xff] }
  0x16   :  { %327 = vmatpush.msra.mxu2 %v97_v38  ;;  %347 = vmatpush.msra.mxu3 %v98_v39  ;;  %v32_v63 = vld [vmem:[%s1496_s1 + $0x88] sm:$0xff]  ;;  %v245_v0 = vld [vmem:[%s1496_s1 + $0x730] sm:$0xff]  ;;  %v246_v1 = vld [vmem:[%s1496_s1 + $0x738] sm:$0xff] }
  0x17   :  { %287 = vmatpush.msra.mxu0 %v95_v44  ;;  %307 = vmatpush.msra.mxu1 %v96_v45  ;;  %v15_v2 = vld [vmem:[%s1496_s1] sm:$0xff]  ;;  %v16_v3 = vld [vmem:[%s1496_s1 + $0x8] sm:$0xff]  ;;  %v229_v4 = vld [vmem:[%s1496_s1 + $0x6b0] sm:$0xff] }
  0x18   :  { %328 = vmatpush.msra.mxu2 %v81_v42  ;;  %348 = vmatpush.msra.mxu3 %v82_v43  ;;  %v230_v5 = vld [vmem:[%s1496_s1 + $0x6b8] sm:$0xff]  ;;  %v259_v6 = vld [vmem:[%s1496_s1 + $0x7a0] sm:$0xff]  ;;  %v260_v7 = vld [vmem:[%s1496_s1 + $0x7a8] sm:$0xff] }
  0x19   :  { %288 = vmatpush.msra.mxu0 %v79_v48  ;;  %308 = vmatpush.msra.mxu1 %v80_v49  ;;  %v213_v8 = vld [vmem:[%s1496_s1 + $0x630] sm:$0xff]  ;;  %v214_v9 = vld [vmem:[%s1496_s1 + $0x638] sm:$0xff]  ;;  %v243_v10 = vld [vmem:[%s1496_s1 + $0x720] sm:$0xff] }
  0x1a   :  { %329 = vmatpush.msra.mxu2 %v65_v46  ;;  %349 = vmatpush.msra.mxu3 %v66_v47  ;;  %v244_v11 = vld [vmem:[%s1496_s1 + $0x728] sm:$0xff]  ;;  %v197_v12 = vld [vmem:[%s1496_s1 + $0x5b0] sm:$0xff]  ;;  %v198_v13 = vld [vmem:[%s1496_s1 + $0x5b8] sm:$0xff] }
  0x1b   :  { %289 = vmatpush.msra.mxu0 %v63_v52  ;;  %309 = vmatpush.msra.mxu1 %v64_v53  ;;  %v227_v14 = vld [vmem:[%s1496_s1 + $0x6a0] sm:$0xff]  ;;  %v228_v15 = vld [vmem:[%s1496_s1 + $0x6a8] sm:$0xff]  ;;  %v181_v16 = vld [vmem:[%s1496_s1 + $0x530] sm:$0xff] }
  0x1c   :  { %330 = vmatpush.msra.mxu2 %v49_v50  ;;  %350 = vmatpush.msra.mxu3 %v50_v51  ;;  %v182_v17 = vld [vmem:[%s1496_s1 + $0x538] sm:$0xff]  ;;  %v211_v18 = vld [vmem:[%s1496_s1 + $0x620] sm:$0xff]  ;;  %v212_v19 = vld [vmem:[%s1496_s1 + $0x628] sm:$0xff] }
  0x1d   :  { %290 = vmatpush.msra.mxu0 %v47_v56  ;;  %310 = vmatpush.msra.mxu1 %v48_v57  ;;  %v165_v20 = vld [vmem:[%s1496_s1 + $0x4b0] sm:$0xff]  ;;  %v166_v21 = vld [vmem:[%s1496_s1 + $0x4b8] sm:$0xff]  ;;  %v195_v22 = vld [vmem:[%s1496_s1 + $0x5a0] sm:$0xff] }
  0x1e   :  { %331 = vmatpush.msra.mxu2 %v33_v54  ;;  %351 = vmatpush.msra.mxu3 %v34_v55  ;;  %v196_v23 = vld [vmem:[%s1496_s1 + $0x5a8] sm:$0xff]  ;;  %v149_v24 = vld [vmem:[%s1496_s1 + $0x430] sm:$0xff]  ;;  %v150_v25 = vld [vmem:[%s1496_s1 + $0x438] sm:$0xff] }
  0x1f   :  { %291 = vmatpush.msra.mxu0 %v31_v62  ;;  %311 = vmatpush.msra.mxu1 %v32_v63  ;;  %v179_v26 = vld [vmem:[%s1496_s1 + $0x520] sm:$0xff]  ;;  %v180_v27 = vld [vmem:[%s1496_s1 + $0x528] sm:$0xff]  ;;  %v133_v28 = vld [vmem:[%s1496_s1 + $0x3b0] sm:$0xff] }
  0x20   :  { %332 = vmatpush.msra.mxu2 %v17_v58  ;;  %352 = vmatpush.msra.mxu3 %v18_v59  ;;  %v134_v29 = vld [vmem:[%s1496_s1 + $0x3b8] sm:$0xff]  ;;  %v163_v30 = vld [vmem:[%s1496_s1 + $0x4a0] sm:$0xff]  ;;  %v164_v31 = vld [vmem:[%s1496_s1 + $0x4a8] sm:$0xff] }
  0x21   :  { %292 = vmatpush.msra.mxu0 %v15_v2  ;;  %312 = vmatpush.msra.mxu1 %v16_v3  ;;  %v117_v32 = vld [vmem:[%s1496_s1 + $0x330] sm:$0xff]  ;;  %v118_v33 = vld [vmem:[%s1496_s1 + $0x338] sm:$0xff]  ;;  %v147_v34 = vld [vmem:[%s1496_s1 + $0x420] sm:$0xff] }
  0x22   :  { %397 = vmatpush.msrb.mxu2 %v261_v60  ;;  %417 = vmatpush.msrb.mxu3 %v262_v61  ;;  %v148_v35 = vld [vmem:[%s1496_s1 + $0x428] sm:$0xff]  ;;  %v101_v36 = vld [vmem:[%s1496_s1 + $0x2b0] sm:$0xff]  ;;  %v102_v37 = vld [vmem:[%s1496_s1 + $0x2b8] sm:$0xff] }
  0x23   :  { %357 = vmatpush.msrb.mxu0 %v259_v6  ;;  %377 = vmatpush.msrb.mxu1 %v260_v7  ;;  %v131_v38 = vld [vmem:[%s1496_s1 + $0x3a0] sm:$0xff]  ;;  %v132_v39 = vld [vmem:[%s1496_s1 + $0x3a8] sm:$0xff]  ;;  %v85_v40 = vld [vmem:[%s1496_s1 + $0x230] sm:$0xff] }
  0x24   :  { %398 = vmatpush.msrb.mxu2 %v245_v0  ;;  %418 = vmatpush.msrb.mxu3 %v246_v1  ;;  %v86_v41 = vld [vmem:[%s1496_s1 + $0x238] sm:$0xff]  ;;  %v115_v42 = vld [vmem:[%s1496_s1 + $0x320] sm:$0xff]  ;;  %v116_v43 = vld [vmem:[%s1496_s1 + $0x328] sm:$0xff] }
  0x25   :  { %358 = vmatpush.msrb.mxu0 %v243_v10  ;;  %378 = vmatpush.msrb.mxu1 %v244_v11  ;;  %v69_v44 = vld [vmem:[%s1496_s1 + $0x1b0] sm:$0xff]  ;;  %v70_v45 = vld [vmem:[%s1496_s1 + $0x1b8] sm:$0xff]  ;;  %v99_v46 = vld [vmem:[%s1496_s1 + $0x2a0] sm:$0xff] }
  0x26   :  { %399 = vmatpush.msrb.mxu2 %v229_v4  ;;  %419 = vmatpush.msrb.mxu3 %v230_v5  ;;  %v100_v47 = vld [vmem:[%s1496_s1 + $0x2a8] sm:$0xff]  ;;  %v53_v48 = vld [vmem:[%s1496_s1 + $0x130] sm:$0xff]  ;;  %v54_v49 = vld [vmem:[%s1496_s1 + $0x138] sm:$0xff] }
  0x27   :  { %359 = vmatpush.msrb.mxu0 %v227_v14  ;;  %379 = vmatpush.msrb.mxu1 %v228_v15  ;;  %v83_v50 = vld [vmem:[%s1496_s1 + $0x220] sm:$0xff]  ;;  %v84_v51 = vld [vmem:[%s1496_s1 + $0x228] sm:$0xff]  ;;  %v37_v52 = vld [vmem:[%s1496_s1 + $0xb0] sm:$0xff] }
  0x28   :  { %400 = vmatpush.msrb.mxu2 %v213_v8  ;;  %420 = vmatpush.msrb.mxu3 %v214_v9  ;;  %v38_v53 = vld [vmem:[%s1496_s1 + $0xb8] sm:$0xff]  ;;  %v67_v54 = vld [vmem:[%s1496_s1 + $0x1a0] sm:$0xff]  ;;  %v68_v55 = vld [vmem:[%s1496_s1 + $0x1a8] sm:$0xff] }
  0x29   :  { %360 = vmatpush.msrb.mxu0 %v211_v18  ;;  %380 = vmatpush.msrb.mxu1 %v212_v19  ;;  %v21_v56 = vld [vmem:[%s1496_s1 + $0x30] sm:$0xff]  ;;  %v22_v57 = vld [vmem:[%s1496_s1 + $0x38] sm:$0xff]  ;;  %v1025_v58 = vld [vmem:[%s1497_s0] sm:$0xff] }
  0x2a   :  { %401 = vmatpush.msrb.mxu2 %v197_v12  ;;  %421 = vmatpush.msrb.mxu3 %v198_v13  ;;  %v265_v59 = vld [vmem:[%s1496_s1 + $0x7d0] sm:$0xff]  ;;  %v266_v60 = vld [vmem:[%s1496_s1 + $0x7d8] sm:$0xff]  ;;  %v51_v61 = vld [vmem:[%s1496_s1 + $0x120] sm:$0xff] }
  0x2b   :  { %361 = vmatpush.msrb.mxu0 %v195_v22  ;;  %381 = vmatpush.msrb.mxu1 %v196_v23  ;;  %v52_v62 = vld [vmem:[%s1496_s1 + $0x128] sm:$0xff]  ;;  %v249_v63 = vld [vmem:[%s1496_s1 + $0x750] sm:$0xff]  ;;  %v250_v0 = vld [vmem:[%s1496_s1 + $0x758] sm:$0xff] }
  0x2c   :  { %402 = vmatpush.msrb.mxu2 %v181_v16  ;;  %422 = vmatpush.msrb.mxu3 %v182_v17  ;;  %v35_v1 = vld [vmem:[%s1496_s1 + $0xa0] sm:$0xff]  ;;  %v36_v2 = vld [vmem:[%s1496_s1 + $0xa8] sm:$0xff]  ;;  %v233_v3 = vld [vmem:[%s1496_s1 + $0x6d0] sm:$0xff] }
  0x2d   :  { %362 = vmatpush.msrb.mxu0 %v179_v26  ;;  %382 = vmatpush.msrb.mxu1 %v180_v27  ;;  %v234_v4 = vld [vmem:[%s1496_s1 + $0x6d8] sm:$0xff]  ;;  %v19_v5 = vld [vmem:[%s1496_s1 + $0x20] sm:$0xff]  ;;  %v20_v6 = vld [vmem:[%s1496_s1 + $0x28] sm:$0xff] }
  0x2e   :  { %403 = vmatpush.msrb.mxu2 %v165_v20  ;;  %423 = vmatpush.msrb.mxu3 %v166_v21  ;;  %v263_v7 = vld [vmem:[%s1496_s1 + $0x7c0] sm:$0xff]  ;;  %v264_v8 = vld [vmem:[%s1496_s1 + $0x7c8] sm:$0xff]  ;;  %v217_v9 = vld [vmem:[%s1496_s1 + $0x650] sm:$0xff] }
  0x2f   :  { %363 = vmatpush.msrb.mxu0 %v163_v30  ;;  %383 = vmatpush.msrb.mxu1 %v164_v31  ;;  %v218_v10 = vld [vmem:[%s1496_s1 + $0x658] sm:$0xff]  ;;  %v247_v11 = vld [vmem:[%s1496_s1 + $0x740] sm:$0xff]  ;;  %v248_v12 = vld [vmem:[%s1496_s1 + $0x748] sm:$0xff] }
  0x30   :  { %404 = vmatpush.msrb.mxu2 %v149_v24  ;;  %424 = vmatpush.msrb.mxu3 %v150_v25  ;;  %v201_v13 = vld [vmem:[%s1496_s1 + $0x5d0] sm:$0xff]  ;;  %v202_v14 = vld [vmem:[%s1496_s1 + $0x5d8] sm:$0xff]  ;;  %v231_v15 = vld [vmem:[%s1496_s1 + $0x6c0] sm:$0xff] }
  0x31   :  { %364 = vmatpush.msrb.mxu0 %v147_v34  ;;  %384 = vmatpush.msrb.mxu1 %v148_v35  ;;  %v232_v16 = vld [vmem:[%s1496_s1 + $0x6c8] sm:$0xff]  ;;  %v185_v17 = vld [vmem:[%s1496_s1 + $0x550] sm:$0xff]  ;;  %v186_v18 = vld [vmem:[%s1496_s1 + $0x558] sm:$0xff] }
  0x32   :  { %405 = vmatpush.msrb.mxu2 %v133_v28  ;;  %425 = vmatpush.msrb.mxu3 %v134_v29  ;;  %v215_v19 = vld [vmem:[%s1496_s1 + $0x640] sm:$0xff]  ;;  %v216_v20 = vld [vmem:[%s1496_s1 + $0x648] sm:$0xff]  ;;  %v169_v21 = vld [vmem:[%s1496_s1 + $0x4d0] sm:$0xff] }
  0x33   :  { %365 = vmatpush.msrb.mxu0 %v131_v38  ;;  %385 = vmatpush.msrb.mxu1 %v132_v39  ;;  %v170_v22 = vld [vmem:[%s1496_s1 + $0x4d8] sm:$0xff]  ;;  %v199_v23 = vld [vmem:[%s1496_s1 + $0x5c0] sm:$0xff]  ;;  %v200_v24 = vld [vmem:[%s1496_s1 + $0x5c8] sm:$0xff] }
  0x34   :  { %406 = vmatpush.msrb.mxu2 %v117_v32  ;;  %426 = vmatpush.msrb.mxu3 %v118_v33  ;;  %v153_v25 = vld [vmem:[%s1496_s1 + $0x450] sm:$0xff]  ;;  %v154_v26 = vld [vmem:[%s1496_s1 + $0x458] sm:$0xff]  ;;  %v183_v27 = vld [vmem:[%s1496_s1 + $0x540] sm:$0xff]  ;;  %v635_v32 = vmov 0  }
  0x35   :  { %366 = vmatpush.msrb.mxu0 %v115_v42  ;;  %386 = vmatpush.msrb.mxu1 %v116_v43  ;;  %v184_v28 = vld [vmem:[%s1496_s1 + $0x548] sm:$0xff]  ;;  %v137_v29 = vld [vmem:[%s1496_s1 + $0x3d0] sm:$0xff]  ;;  %v138_v30 = vld [vmem:[%s1496_s1 + $0x3d8] sm:$0xff] }
  0x36   :  { %407 = vmatpush.msrb.mxu2 %v101_v36  ;;  %427 = vmatpush.msrb.mxu3 %v102_v37  ;;  %v271_v31 = vld [vmem:[%s1498_s2] sm:$0xff]  ;;  %v168_v34 = vld [vmem:[%s1496_s1 + $0x4c8] sm:$0xff]  ;;  %v121_v35 = vld [vmem:[%s1496_s1 + $0x350] sm:$0xff] }
  0x37   :  { %367 = vmatpush.msrb.mxu0 %v99_v46  ;;  %387 = vmatpush.msrb.mxu1 %v100_v47  ;;  %v167_v33 = vld [vmem:[%s1496_s1 + $0x4c0] sm:$0xff]  ;;  %v122_v36 = vld [vmem:[%s1496_s1 + $0x358] sm:$0xff]  ;;  %v152_v38 = vld [vmem:[%s1496_s1 + $0x448] sm:$0xff] }
  0x38   :  { %408 = vmatpush.msrb.mxu2 %v85_v40  ;;  %428 = vmatpush.msrb.mxu3 %v86_v41  ;;  %v151_v37 = vld [vmem:[%s1496_s1 + $0x440] sm:$0xff]  ;;  %v105_v39 = vld [vmem:[%s1496_s1 + $0x2d0] sm:$0xff]  ;;  %v106_v40 = vld [vmem:[%s1496_s1 + $0x2d8] sm:$0xff] }
  0x39   :  { %368 = vmatpush.msrb.mxu0 %v83_v50  ;;  %388 = vmatpush.msrb.mxu1 %v84_v51  ;;  %v135_v41 = vld [vmem:[%s1496_s1 + $0x3c0] sm:$0xff]  ;;  %v136_v42 = vld [vmem:[%s1496_s1 + $0x3c8] sm:$0xff]  ;;  %v89_v43 = vld [vmem:[%s1496_s1 + $0x250] sm:$0xff] }
  0x3a   :  { %409 = vmatpush.msrb.mxu2 %v69_v44  ;;  %429 = vmatpush.msrb.mxu3 %v70_v45  ;;  %v90_v44 = vld [vmem:[%s1496_s1 + $0x258] sm:$0xff]  ;;  %v119_v45 = vld [vmem:[%s1496_s1 + $0x340] sm:$0xff]  ;;  %v120_v46 = vld [vmem:[%s1496_s1 + $0x348] sm:$0xff] }
  0x3b   :  { %369 = vmatpush.msrb.mxu0 %v67_v54  ;;  %389 = vmatpush.msrb.mxu1 %v68_v55  ;;  %v73_v47 = vld [vmem:[%s1496_s1 + $0x1d0] sm:$0xff]  ;;  %v104_v50 = vld [vmem:[%s1496_s1 + $0x2c8] sm:$0xff] }
  0x3c   :  { %410 = vmatpush.msrb.mxu2 %v53_v48  ;;  %430 = vmatpush.msrb.mxu3 %v54_v49  ;;  %v74_v48 = vld [vmem:[%s1496_s1 + $0x1d8] sm:$0xff]  ;;  %v103_v49 = vld [vmem:[%s1496_s1 + $0x2c0] sm:$0xff]  ;;  %v57_v51 = vld [vmem:[%s1496_s1 + $0x150] sm:$0xff] }
  0x3d   :  { %333 = vmatmul.f32.vlgmr.msra.gmra.mxu2 %v1025_v58  ;;  %353 = vmatmul.f32.vlgmr.msra.gmra.mxu3 %v1025_v58  ;;  %v88_v54 = vld [vmem:[%s1496_s1 + $0x248] sm:$0xff]  ;;  %v41_v55 = vld [vmem:[%s1496_s1 + $0xd0] sm:$0xff] }
  0x3e   :  { %411 = vmatpush.msrb.mxu2 %v37_v52  ;;  %431 = vmatpush.msrb.mxu3 %v38_v53  ;;  %v58_v52 = vld [vmem:[%s1496_s1 + $0x158] sm:$0xff]  ;;  %v87_v53 = vld [vmem:[%s1496_s1 + $0x240] sm:$0xff] }
  0x3f   :  { %370 = vmatpush.msrb.mxu0 %v51_v61  ;;  %390 = vmatpush.msrb.mxu1 %v52_v62  ;;  %v26_v61 = vld [vmem:[%s1496_s1 + $0x58] sm:$0xff]  ;;  %v269_v62 = vld [vmem:[%s1496_s1 + $0x7f0] sm:$0xff] }
  0x40   :  { %412 = vmatpush.msrb.mxu2 %v21_v56  ;;  %432 = vmatpush.msrb.mxu3 %v22_v57  ;;  %v42_v56 = vld [vmem:[%s1496_s1 + $0xd8] sm:$0xff]  ;;  %v71_v57 = vld [vmem:[%s1496_s1 + $0x1c0] sm:$0xff] }
  0x41   :  { %371 = vmatpush.msrb.mxu0 %v35_v1  ;;  %391 = vmatpush.msrb.mxu1 %v36_v2  ;;  %v56_v1 = vld [vmem:[%s1496_s1 + $0x148] sm:$0xff]  ;;  %v253_v2 = vld [vmem:[%s1496_s1 + $0x770] sm:$0xff] }
  0x42   :  { %477 = vmatpush.msra.mxu2 %v265_v59  ;;  %497 = vmatpush.msra.mxu3 %v266_v60  ;;  %v72_v59 = vld [vmem:[%s1496_s1 + $0x1c8] sm:$0xff]  ;;  %v25_v60 = vld [vmem:[%s1496_s1 + $0x50] sm:$0xff] }
  0x43   :  { %372 = vmatpush.msrb.mxu0 %v19_v5  ;;  %392 = vmatpush.msrb.mxu1 %v20_v6  ;;  %v40_v5 = vld [vmem:[%s1496_s1 + $0xc8] sm:$0xff]  ;;  %v237_v6 = vld [vmem:[%s1496_s1 + $0x6f0] sm:$0xff] }
  0x44   :  { %478 = vmatpush.msra.mxu2 %v249_v63  ;;  %498 = vmatpush.msra.mxu3 %v250_v0  ;;  %v270_v63 = vld [vmem:[%s1496_s1 + $0x7f8] sm:$0xff]  ;;  %v55_v0 = vld [vmem:[%s1496_s1 + $0x140] sm:$0xff] }
  0x45   :  { %293 = vmatmul.f32.vlgmr.msra.gmra.mxu0 %v1025_v58  ;;  %313 = vmatmul.f32.vlgmr.msra.gmra.mxu1 %v1025_v58 }
  0x46   :  { %479 = vmatpush.msra.mxu2 %v233_v3  ;;  %499 = vmatpush.msra.mxu3 %v234_v4  ;;  %v254_v3 = vld [vmem:[%s1496_s1 + $0x778] sm:$0xff]  ;;  %v39_v4 = vld [vmem:[%s1496_s1 + $0xc0] sm:$0xff] }
  0x47   :  { %437 = vmatpush.msra.mxu0 %v263_v7  ;;  %457 = vmatpush.msra.mxu1 %v264_v8  ;;  %v238_v7 = vld [vmem:[%s1496_s1 + $0x6f8] sm:$0xff]  ;;  %v23_v8 = vld [vmem:[%s1496_s1 + $0x40] sm:$0xff] }
  0x48   :  { %480 = vmatpush.msra.mxu2 %v217_v9  ;;  %500 = vmatpush.msra.mxu3 %v218_v10  ;;  %v24_v9 = vld [vmem:[%s1496_s1 + $0x48] sm:$0xff]  ;;  %v267_v10 = vld [vmem:[%s1496_s1 + $0x7e0] sm:$0xff] }
  0x49   :  { %438 = vmatpush.msra.mxu0 %v247_v11  ;;  %458 = vmatpush.msra.mxu1 %v248_v12  ;;  %v268_v11 = vld [vmem:[%s1496_s1 + $0x7e8] sm:$0xff]  ;;  %v221_v12 = vld [vmem:[%s1496_s1 + $0x670] sm:$0xff] }
  0x4a   :  { %481 = vmatpush.msra.mxu2 %v201_v13  ;;  %501 = vmatpush.msra.mxu3 %v202_v14  ;;  %v222_v13 = vld [vmem:[%s1496_s1 + $0x678] sm:$0xff]  ;;  %v251_v14 = vld [vmem:[%s1496_s1 + $0x760] sm:$0xff] }
  0x4b   :  { %439 = vmatpush.msra.mxu0 %v231_v15  ;;  %459 = vmatpush.msra.mxu1 %v232_v16  ;;  %v252_v15 = vld [vmem:[%s1496_s1 + $0x768] sm:$0xff]  ;;  %v205_v16 = vld [vmem:[%s1496_s1 + $0x5f0] sm:$0xff] }
  0x4c   :  { %482 = vmatpush.msra.mxu2 %v185_v17  ;;  %502 = vmatpush.msra.mxu3 %v186_v18  ;;  %v206_v17 = vld [vmem:[%s1496_s1 + $0x5f8] sm:$0xff]  ;;  %v235_v18 = vld [vmem:[%s1496_s1 + $0x6e0] sm:$0xff] }
  0x4d   :  { %440 = vmatpush.msra.mxu0 %v215_v19  ;;  %460 = vmatpush.msra.mxu1 %v216_v20  ;;  %v236_v19 = vld [vmem:[%s1496_s1 + $0x6e8] sm:$0xff]  ;;  %v189_v20 = vld [vmem:[%s1496_s1 + $0x570] sm:$0xff] }
  0x4e   :  { %483 = vmatpush.msra.mxu2 %v169_v21  ;;  %503 = vmatpush.msra.mxu3 %v170_v22  ;;  %v190_v21 = vld [vmem:[%s1496_s1 + $0x578] sm:$0xff]  ;;  %v219_v22 = vld [vmem:[%s1496_s1 + $0x660] sm:$0xff] }
  0x4f   :  { %441 = vmatpush.msra.mxu0 %v199_v23  ;;  %461 = vmatpush.msra.mxu1 %v200_v24  ;;  %v220_v23 = vld [vmem:[%s1496_s1 + $0x668] sm:$0xff]  ;;  %v173_v24 = vld [vmem:[%s1496_s1 + $0x4f0] sm:$0xff] }
  0x50   :  { %484 = vmatpush.msra.mxu2 %v153_v25  ;;  %504 = vmatpush.msra.mxu3 %v154_v26  ;;  %v174_v25 = vld [vmem:[%s1496_s1 + $0x4f8] sm:$0xff]  ;;  %v203_v26 = vld [vmem:[%s1496_s1 + $0x5e0] sm:$0xff] }
  0x51   :  { %634 = vset.pattern.permute.xlu0 %v635_v32  ;;  %442 = vmatpush.msra.mxu0 %v183_v27  ;;  %v204_v27 = vld [vmem:[%s1496_s1 + $0x5e8] sm:$0xff]  ;;  %v141_v32 = vld [vmem:[%s1496_s1 + $0x3f0] sm:$0xff] }
  0x52   :  { %462 = vmatpush.msra.mxu1 %v184_v28  ;;  %485 = vmatpush.msra.mxu2 %v137_v29  ;;  %v157_v28 = vld [vmem:[%s1496_s1 + $0x470] sm:$0xff]  ;;  %v158_v29 = vld [vmem:[%s1496_s1 + $0x478] sm:$0xff] }
  0x53   :  { %505 = vmatpush.msra.mxu3 %v138_v30  ;;  %274 = vperm.xlu0 %634, %v271_v31   ;;  %v187_v30 = vld [vmem:[%s1496_s1 + $0x560] sm:$0xff]  ;;  %v188_v31 = vld [vmem:[%s1496_s1 + $0x568] sm:$0xff] }
  0x54   :  { %443 = vmatpush.msra.mxu0 %v167_v33  ;;  %463 = vmatpush.msra.mxu1 %v168_v34  ;;  %v142_v33 = vld [vmem:[%s1496_s1 + $0x3f8] sm:$0xff]  ;;  %v171_v34 = vld [vmem:[%s1496_s1 + $0x4e0] sm:$0xff] }
  0x55   :  { %486 = vmatpush.msra.mxu2 %v121_v35  ;;  %506 = vmatpush.msra.mxu3 %v122_v36  ;;  %v172_v35 = vld [vmem:[%s1496_s1 + $0x4e8] sm:$0xff]  ;;  %v125_v36 = vld [vmem:[%s1496_s1 + $0x370] sm:$0xff] }
  0x56   :  { %444 = vmatpush.msra.mxu0 %v151_v37  ;;  %464 = vmatpush.msra.mxu1 %v152_v38  ;;  %v126_v37 = vld [vmem:[%s1496_s1 + $0x378] sm:$0xff]  ;;  %v155_v38 = vld [vmem:[%s1496_s1 + $0x460] sm:$0xff] }
  0x57   :  { %487 = vmatpush.msra.mxu2 %v105_v39  ;;  %507 = vmatpush.msra.mxu3 %v106_v40  ;;  %v156_v39 = vld [vmem:[%s1496_s1 + $0x468] sm:$0xff]  ;;  %v109_v40 = vld [vmem:[%s1496_s1 + $0x2f0] sm:$0xff] }
  0x58   :  { %445 = vmatpush.msra.mxu0 %v135_v41  ;;  %465 = vmatpush.msra.mxu1 %v136_v42  ;;  %v110_v41 = vld [vmem:[%s1496_s1 + $0x2f8] sm:$0xff]  ;;  %v139_v42 = vld [vmem:[%s1496_s1 + $0x3e0] sm:$0xff] }
  0x59   :  { %488 = vmatpush.msra.mxu2 %v89_v43  ;;  %508 = vmatpush.msra.mxu3 %v90_v44  ;;  %v140_v43 = vld [vmem:[%s1496_s1 + $0x3e8] sm:$0xff]  ;;  %v93_v44 = vld [vmem:[%s1496_s1 + $0x270] sm:$0xff] }
  0x5a   :  { %446 = vmatpush.msra.mxu0 %v119_v45  ;;  %466 = vmatpush.msra.mxu1 %v120_v46  ;;  %v94_v45 = vld [vmem:[%s1496_s1 + $0x278] sm:$0xff]  ;;  %v123_v46 = vld [vmem:[%s1496_s1 + $0x360] sm:$0xff] }
  0x5b   :  { %489 = vmatpush.msra.mxu2 %v73_v47  ;;  %509 = vmatpush.msra.mxu3 %v74_v48  ;;  %v124_v47 = vld [vmem:[%s1496_s1 + $0x368] sm:$0xff]  ;;  %v77_v48 = vld [vmem:[%s1496_s1 + $0x1f0] sm:$0xff] }
  0x5c   :  { %447 = vmatpush.msra.mxu0 %v103_v49  ;;  %467 = vmatpush.msra.mxu1 %v104_v50  ;;  %v78_v49 = vld [vmem:[%s1496_s1 + $0x1f8] sm:$0xff]  ;;  %v107_v50 = vld [vmem:[%s1496_s1 + $0x2e0] sm:$0xff] }
  0x5d   :  { %490 = vmatpush.msra.mxu2 %v57_v51  ;;  %510 = vmatpush.msra.mxu3 %v58_v52  ;;  %v108_v51 = vld [vmem:[%s1496_s1 + $0x2e8] sm:$0xff]  ;;  %v61_v52 = vld [vmem:[%s1496_s1 + $0x170] sm:$0xff] }
  0x5e   :  { %448 = vmatpush.msra.mxu0 %v87_v53  ;;  %468 = vmatpush.msra.mxu1 %v88_v54  ;;  %v62_v53 = vld [vmem:[%s1496_s1 + $0x178] sm:$0xff]  ;;  %v91_v54 = vld [vmem:[%s1496_s1 + $0x260] sm:$0xff] }
  0x5f   :  { %491 = vmatpush.msra.mxu2 %v41_v55  ;;  %511 = vmatpush.msra.mxu3 %v42_v56  ;;  %v92_v55 = vld [vmem:[%s1496_s1 + $0x268] sm:$0xff]  ;;  %v45_v56 = vld [vmem:[%s1496_s1 + $0xf0] sm:$0xff] }
  0x60   :  { %449 = vmatpush.msra.mxu0 %v71_v57  ;;  %469 = vmatpush.msra.mxu1 %v72_v59  ;;  %v46_v57 = vld [vmem:[%s1496_s1 + $0xf8] sm:$0xff]  ;;  %v75_v59 = vld [vmem:[%s1496_s1 + $0x1e0] sm:$0xff] }
  0x61   :  { %492 = vmatpush.msra.mxu2 %v25_v60  ;;  %512 = vmatpush.msra.mxu3 %v26_v61  ;;  %v76_v60 = vld [vmem:[%s1496_s1 + $0x1e8] sm:$0xff]  ;;  %v29_v61 = vld [vmem:[%s1496_s1 + $0x70] sm:$0xff] }
  0x62   :  { %413 = vmatmul.f32.vlgmr.msrb.gmra.mxu2 %v1025_v58  ;;  %433 = vmatmul.f32.vlgmr.msrb.gmra.mxu3 %v1025_v58 }
  0x63   :  { %557 = vmatpush.msrb.mxu2 %v269_v62  ;;  %577 = vmatpush.msrb.mxu3 %v270_v63  ;;  %v30_v62 = vld [vmem:[%s1496_s1 + $0x78] sm:$0xff]  ;;  %v59_v63 = vld [vmem:[%s1496_s1 + $0x160] sm:$0xff] }
  0x64   :  { %450 = vmatpush.msra.mxu0 %v55_v0  ;;  %470 = vmatpush.msra.mxu1 %v56_v1  ;;  %v60_v0 = vld [vmem:[%s1496_s1 + $0x168] sm:$0xff]  ;;  %v43_v1 = vld [vmem:[%s1496_s1 + $0xe0] sm:$0xff] }
  0x65   :  { %558 = vmatpush.msrb.mxu2 %v253_v2  ;;  %578 = vmatpush.msrb.mxu3 %v254_v3  ;;  %v44_v2 = vld [vmem:[%s1496_s1 + $0xe8] sm:$0xff]  ;;  %v27_v3 = vld [vmem:[%s1496_s1 + $0x60] sm:$0xff] }
  0x66   :  { %451 = vmatpush.msra.mxu0 %v39_v4  ;;  %471 = vmatpush.msra.mxu1 %v40_v5  ;;  %v28_v4 = vld [vmem:[%s1496_s1 + $0x68] sm:$0xff] }
  0x67   :  { %559 = vmatpush.msrb.mxu2 %v237_v6  ;;  %579 = vmatpush.msrb.mxu3 %v238_v7 }
  0x68   :  { %452 = vmatpush.msra.mxu0 %v23_v8  ;;  %472 = vmatpush.msra.mxu1 %v24_v9 }
  0x69   :  { %373 = vmatmul.f32.vlgmr.msrb.gmra.mxu0 %v1025_v58  ;;  %393 = vmatmul.f32.vlgmr.msrb.gmra.mxu1 %v1025_v58 }
  0x6a   :  { %517 = vmatpush.msrb.mxu0 %v267_v10  ;;  %537 = vmatpush.msrb.mxu1 %v268_v11 }
  0x6b   :  { %560 = vmatpush.msrb.mxu2 %v221_v12  ;;  %580 = vmatpush.msrb.mxu3 %v222_v13 }
  0x6c   :  { %518 = vmatpush.msrb.mxu0 %v251_v14  ;;  %538 = vmatpush.msrb.mxu1 %v252_v15 }
  0x6d   :  { %561 = vmatpush.msrb.mxu2 %v205_v16  ;;  %581 = vmatpush.msrb.mxu3 %v206_v17 }
  0x6e   :  { %519 = vmatpush.msrb.mxu0 %v235_v18  ;;  %539 = vmatpush.msrb.mxu1 %v236_v19 }
  0x6f   :  { %562 = vmatpush.msrb.mxu2 %v189_v20  ;;  %582 = vmatpush.msrb.mxu3 %v190_v21 }
  0x70   :  { %520 = vmatpush.msrb.mxu0 %v219_v22  ;;  %540 = vmatpush.msrb.mxu1 %v220_v23 }
  0x71   :  { %563 = vmatpush.msrb.mxu2 %v173_v24  ;;  %583 = vmatpush.msrb.mxu3 %v174_v25 }
  0x72   :  { %521 = vmatpush.msrb.mxu0 %v203_v26  ;;  %541 = vmatpush.msrb.mxu1 %v204_v27 }
  0x73   :  { %564 = vmatpush.msrb.mxu2 %v157_v28  ;;  %584 = vmatpush.msrb.mxu3 %v158_v29 }
  0x74   :  { %522 = vmatpush.msrb.mxu0 %v187_v30  ;;  %542 = vmatpush.msrb.mxu1 %v188_v31 }
  0x75   :  { %565 = vmatpush.msrb.mxu2 %v141_v32  ;;  %585 = vmatpush.msrb.mxu3 %v142_v33 }
  0x76   :  { %523 = vmatpush.msrb.mxu0 %v171_v34  ;;  %543 = vmatpush.msrb.mxu1 %v172_v35 }
  0x77   :  { %566 = vmatpush.msrb.mxu2 %v125_v36  ;;  %586 = vmatpush.msrb.mxu3 %v126_v37 }
  0x78   :  { %524 = vmatpush.msrb.mxu0 %v155_v38  ;;  %544 = vmatpush.msrb.mxu1 %v156_v39 }
  0x79   :  { %567 = vmatpush.msrb.mxu2 %v109_v40  ;;  %587 = vmatpush.msrb.mxu3 %v110_v41 }
  0x7a   :  { %525 = vmatpush.msrb.mxu0 %v139_v42  ;;  %545 = vmatpush.msrb.mxu1 %v140_v43 }
  0x7b   :  { %568 = vmatpush.msrb.mxu2 %v93_v44  ;;  %588 = vmatpush.msrb.mxu3 %v94_v45 }
  0x7c   :  { %493 = vmatmul.f32.vlgmr.msra.gmra.mxu2 %v1025_v58  ;;  %513 = vmatmul.f32.vlgmr.msra.gmra.mxu3 %v1025_v58 }
  0x7d   :  { %526 = vmatpush.msrb.mxu0 %v123_v46  ;;  %546 = vmatpush.msrb.mxu1 %v124_v47 }
  0x7e   :  { %569 = vmatpush.msrb.mxu2 %v77_v48  ;;  %589 = vmatpush.msrb.mxu3 %v78_v49 }
  0x7f   :  { %527 = vmatpush.msrb.mxu0 %v107_v50  ;;  %547 = vmatpush.msrb.mxu1 %v108_v51 }
  0x80   :  { %570 = vmatpush.msrb.mxu2 %v61_v52  ;;  %590 = vmatpush.msrb.mxu3 %v62_v53 }
  0x81   :  { %528 = vmatpush.msrb.mxu0 %v91_v54  ;;  %548 = vmatpush.msrb.mxu1 %v92_v55 }
  0x82   :  { %571 = vmatpush.msrb.mxu2 %v45_v56  ;;  %591 = vmatpush.msrb.mxu3 %v46_v57 }
  0x83   :  { %453 = vmatmul.f32.vlgmr.msra.gmra.mxu0 %v1025_v58  ;;  %473 = vmatmul.f32.vlgmr.msra.gmra.mxu1 %v1025_v58 }
  0x84   :  { %529 = vmatpush.msrb.mxu0 %v75_v59  ;;  %549 = vmatpush.msrb.mxu1 %v76_v60 }
  0x85   :  { %572 = vmatpush.msrb.mxu2 %v29_v61  ;;  %592 = vmatpush.msrb.mxu3 %v30_v62 }
  0x86   :  { %573 = vmatmul.f32.vlgmr.msrb.gmra.mxu2 %v1025_v58  ;;  %593 = vmatmul.f32.vlgmr.msrb.gmra.mxu3 %v1025_v58 }
  0x87   :  { %530 = vmatpush.msrb.mxu0 %v59_v63  ;;  %550 = vmatpush.msrb.mxu1 %v60_v0 }
  0x89   :  { %531 = vmatpush.msrb.mxu0 %v43_v1  ;;  %551 = vmatpush.msrb.mxu1 %v44_v2 }
  0x8b   :  { %532 = vmatpush.msrb.mxu0 %v27_v3  ;;  %552 = vmatpush.msrb.mxu1 %v28_v4 }
  0x8c   :  { %533 = vmatmul.f32.vlgmr.msrb.gmra.mxu0 %v1025_v58  ;;  %553 = vmatmul.f32.vlgmr.msrb.gmra.mxu1 %v1025_v58 }
  0xc0   :  { %v334_v5 = vpop.f32.mrf.mxu2  ;;  %v354_v6 = vpop.f32.mrf.mxu3 }
  0xc2   :  { %v294_v7 = vpop.f32.mrf.mxu0  ;;  %v314_v8 = vpop.f32.mrf.mxu1 }
  0xc5   :  { %v275_v9 = vpop.permute.xlu0 %274 }
  0xc6   :  { %v295_v10 = vadd.f32 %v294_v7, %v275_v9  ;;  %v315_v11 = vadd.f32 %v314_v8, %v275_v9  ;;  %v335_v12 = vadd.f32 %v334_v5, %v275_v9  ;;  %v355_v13 = vadd.f32 %v354_v6, %v275_v9 }
  0xc8   :  { %v597_v14 = vmax.f32 %v295_v10, 0.0  ;;  %v598_v15 = vmax.f32 %v315_v11, 0.0  ;;  %v599_v16 = vmax.f32 %v335_v12, 0.0  ;;  %v600_v17 = vmax.f32 %v355_v13, 0.0 }
  0xca   :  { %613 = vst [vmem:[%s1499_s3] sm:$0xff] %v597_v14 }
  0xcb   :  { %614 = vst [vmem:[%s1499_s3 + $0x8] sm:$0xff] %v598_v15 }
  0xcc   :  { %615 = vst [vmem:[%s1499_s3 + $0x10] sm:$0xff] %v599_v16 }
  0xcd   :  { %616 = vst [vmem:[%s1499_s3 + $0x18] sm:$0xff] %v600_v17 }
  0xe5   :  { %v414_v58 = vpop.f32.mrf.mxu2  ;;  %v434_v18 = vpop.f32.mrf.mxu3 }
  0xe6   :  { %v374_v19 = vpop.f32.mrf.mxu0  ;;  %v394_v20 = vpop.f32.mrf.mxu1  ;;  %v415_v21 = vadd.f32 %v414_v58, %v275_v9  ;;  %v435_v22 = vadd.f32 %v434_v18, %v275_v9 }
  0xe7   :  { %v375_v23 = vadd.f32 %v374_v19, %v275_v9  ;;  %v395_v24 = vadd.f32 %v394_v20, %v275_v9 }
  0xe8   :  { %v603_v25 = vmax.f32 %v415_v21, 0.0  ;;  %v604_v28 = vmax.f32 %v435_v22, 0.0 }
  0xe9   :  { %v601_v26 = vmax.f32 %v375_v23, 0.0  ;;  %v602_v27 = vmax.f32 %v395_v24, 0.0 }
  0xea   :  { %619 = vst [vmem:[%s1499_s3 + $0x30] sm:$0xff] %v603_v25 }
  0xeb   :  { %617 = vst [vmem:[%s1499_s3 + $0x20] sm:$0xff] %v601_v26 }
  0xec   :  { %618 = vst [vmem:[%s1499_s3 + $0x28] sm:$0xff] %v602_v27 }
  0xed   :  { %620 = vst [vmem:[%s1499_s3 + $0x38] sm:$0xff] %v604_v28 }
  0xff   :  { %v494_v29 = vpop.f32.mrf.mxu2  ;;  %v514_v30 = vpop.f32.mrf.mxu3 }
 0x100   :  { %v454_v31 = vpop.f32.mrf.mxu0  ;;  %v474_v32 = vpop.f32.mrf.mxu1  ;;  %v495_v33 = vadd.f32 %v494_v29, %v275_v9  ;;  %v515_v34 = vadd.f32 %v514_v30, %v275_v9 }
 0x101   :  { %v455_v35 = vadd.f32 %v454_v31, %v275_v9  ;;  %v475_v36 = vadd.f32 %v474_v32, %v275_v9 }
 0x102   :  { %v607_v37 = vmax.f32 %v495_v33, 0.0  ;;  %v608_v40 = vmax.f32 %v515_v34, 0.0 }
 0x103   :  { %v605_v38 = vmax.f32 %v455_v35, 0.0  ;;  %v606_v39 = vmax.f32 %v475_v36, 0.0 }
 0x104   :  { %623 = vst [vmem:[%s1499_s3 + $0x50] sm:$0xff] %v607_v37 }
 0x105   :  { %621 = vst [vmem:[%s1499_s3 + $0x40] sm:$0xff] %v605_v38 }
 0x106   :  { %622 = vst [vmem:[%s1499_s3 + $0x48] sm:$0xff] %v606_v39 }
 0x107   :  { %624 = vst [vmem:[%s1499_s3 + $0x58] sm:$0xff] %v608_v40 }
 0x109   :  { %v534_v41 = vpop.f32.mrf.mxu0  ;;  %v554_v42 = vpop.f32.mrf.mxu1 }
 0x10a   :  { %v535_v43 = vadd.f32 %v534_v41, %v275_v9  ;;  %v555_v44 = vadd.f32 %v554_v42, %v275_v9  ;;  %v574_v45 = vpop.f32.mrf.mxu2  ;;  %v594_v46 = vpop.f32.mrf.mxu3 }
 0x10b   :  { %v575_v47 = vadd.f32 %v574_v45, %v275_v9  ;;  %v595_v48 = vadd.f32 %v594_v46, %v275_v9 }
 0x10c   :  { %v609_v49 = vmax.f32 %v535_v43, 0.0  ;;  %v610_v50 = vmax.f32 %v555_v44, 0.0 }
 0x10d   :  { %v611_v51 = vmax.f32 %v575_v47, 0.0  ;;  %v612_v52 = vmax.f32 %v595_v48, 0.0 }
 0x10e   :  { %625 = vst [vmem:[%s1499_s3 + $0x60] sm:$0xff] %v609_v49 }
 0x10f   :  { %626 = vst [vmem:[%s1499_s3 + $0x68] sm:$0xff] %v610_v50 }
 0x110   :  { %627 = vst [vmem:[%s1499_s3 + $0x70] sm:$0xff] %v611_v51 }
 0x111   :  { %628 = vst [vmem:[%s1499_s3 + $0x78] sm:$0xff] %v612_v52 }

// kernel: forward.4
= control target key start
LH: loop header
LB: loop body
LE: loop exit
PB: predicated region body
PF: predicated region fallthrough
CT: control target
= control target key end

     0   :  { %v102_v6 = vmov 0   ;;  %s231_s1 = inlined_call_operand.vmem [shape: f32[256,128], index: 1, kind: input, shape index: {}]   ;;  %s232_s2 = inlined_call_operand.vmem [shape: f32[8,1], index: 2, kind: input, shape index: {}]   ;;  %s233_s0 = inlined_call_operand.vmem [shape: f32[8,256], index: 0, kind: input, shape index: {}]   ;;  %s234_s3 = inlined_call_operand.vmem [shape: f32[8,128], index: 3, kind: output, shape index: {}]  }
   0x1   :  { %v31_v0 = vld [vmem:[%s231_s1 + $0x78] sm:$0xff]  ;;  %v30_v1 = vld [vmem:[%s231_s1 + $0x70] sm:$0xff]  ;;  %v29_v4 = vld [vmem:[%s231_s1 + $0x68] sm:$0xff]  ;;  %101 = vset.pattern.permute.xlu0 %v102_v6 }
   0x2   :  { %v47_v2 = vld [vmem:[%s231_s1 + $0xf8] sm:$0xff]  ;;  %54 = vmatpush.msra.mxu0 %v31_v0  ;;  %v46_v3 = vld [vmem:[%s231_s1 + $0xf0] sm:$0xff]  ;;  %v45_v5 = vld [vmem:[%s231_s1 + $0xe8] sm:$0xff] }
   0x3   :  { %74 = vmatpush.msra.mxu1 %v47_v2  ;;  %v28_v7 = vld [vmem:[%s231_s1 + $0x60] sm:$0xff]  ;;  %v27_v9 = vld [vmem:[%s231_s1 + $0x58] sm:$0xff]  ;;  %v26_v11 = vld [vmem:[%s231_s1 + $0x50] sm:$0xff] }
   0x4   :  { %55 = vmatpush.msra.mxu0 %v30_v1  ;;  %v44_v8 = vld [vmem:[%s231_s1 + $0xe0] sm:$0xff]  ;;  %v43_v10 = vld [vmem:[%s231_s1 + $0xd8] sm:$0xff]  ;;  %v42_v12 = vld [vmem:[%s231_s1 + $0xd0] sm:$0xff] }
   0x5   :  { %75 = vmatpush.msra.mxu1 %v46_v3  ;;  %v25_v13 = vld [vmem:[%s231_s1 + $0x48] sm:$0xff]  ;;  %v48_v15 = vld [vmem:[%s232_s2] sm:$0xff]  ;;  %v23_v18 = vld [vmem:[%s231_s1 + $0x38] sm:$0xff] }
   0x6   :  { %56 = vmatpush.msra.mxu0 %v29_v4  ;;  %v41_v14 = vld [vmem:[%s231_s1 + $0xc8] sm:$0xff]  ;;  %v24_v16 = vld [vmem:[%s231_s1 + $0x40] sm:$0xff]  ;;  %51 = vperm.xlu0 %101, %v48_v15   ;;  %v39_v19 = vld [vmem:[%s231_s1 + $0xb8] sm:$0xff] }
   0x7   :  { %76 = vmatpush.msra.mxu1 %v45_v5  ;;  %v40_v17 = vld [vmem:[%s231_s1 + $0xc0] sm:$0xff]  ;;  %v22_v20 = vld [vmem:[%s231_s1 + $0x30] sm:$0xff]  ;;  %v21_v22 = vld [vmem:[%s231_s1 + $0x28] sm:$0xff] }
   0x8   :  { %57 = vmatpush.msra.mxu0 %v28_v7  ;;  %v38_v21 = vld [vmem:[%s231_s1 + $0xb0] sm:$0xff]  ;;  %v37_v23 = vld [vmem:[%s231_s1 + $0xa8] sm:$0xff]  ;;  %v20_v24 = vld [vmem:[%s231_s1 + $0x20] sm:$0xff] }
   0x9   :  { %77 = vmatpush.msra.mxu1 %v44_v8  ;;  %v36_v25 = vld [vmem:[%s231_s1 + $0xa0] sm:$0xff]  ;;  %v19_v26 = vld [vmem:[%s231_s1 + $0x18] sm:$0xff]  ;;  %v18_v28 = vld [vmem:[%s231_s1 + $0x10] sm:$0xff] }
   0xa   :  { %58 = vmatpush.msra.mxu0 %v27_v9  ;;  %v35_v27 = vld [vmem:[%s231_s1 + $0x98] sm:$0xff]  ;;  %v34_v29 = vld [vmem:[%s231_s1 + $0x90] sm:$0xff]  ;;  %v17_v30 = vld [vmem:[%s231_s1 + $0x8] sm:$0xff] }
   0xb   :  { %78 = vmatpush.msra.mxu1 %v43_v10  ;;  %v33_v31 = vld [vmem:[%s231_s1 + $0x88] sm:$0xff]  ;;  %v16_v32 = vld [vmem:[%s231_s1] sm:$0xff] }
   0xc   :  { %59 = vmatpush.msra.mxu0 %v26_v11  ;;  %v32_v33 = vld [vmem:[%s231_s1 + $0x80] sm:$0xff]  ;;  %v15_v35 = vld [vmem:[%s233_s0 + $0x8] sm:$0xff] }
   0xd   :  { %79 = vmatpush.msra.mxu1 %v42_v12  ;;  %v14_v34 = vld [vmem:[%s233_s0] sm:$0xff] }
   0xe   :  { %60 = vmatpush.msra.mxu0 %v25_v13 }
   0xf   :  { %80 = vmatpush.msra.mxu1 %v41_v14 }
  0x10   :  { %61 = vmatpush.msra.mxu0 %v24_v16 }
  0x11   :  { %81 = vmatpush.msra.mxu1 %v40_v17 }
  0x12   :  { %62 = vmatpush.msra.mxu0 %v23_v18 }
  0x13   :  { %82 = vmatpush.msra.mxu1 %v39_v19 }
  0x14   :  { %63 = vmatpush.msra.mxu0 %v22_v20 }
  0x15   :  { %83 = vmatpush.msra.mxu1 %v38_v21 }
  0x16   :  { %64 = vmatpush.msra.mxu0 %v21_v22 }
  0x17   :  { %84 = vmatpush.msra.mxu1 %v37_v23 }
  0x18   :  { %65 = vmatpush.msra.mxu0 %v20_v24 }
  0x19   :  { %85 = vmatpush.msra.mxu1 %v36_v25 }
  0x1a   :  { %66 = vmatpush.msra.mxu0 %v19_v26 }
  0x1b   :  { %86 = vmatpush.msra.mxu1 %v35_v27 }
  0x1c   :  { %67 = vmatpush.msra.mxu0 %v18_v28 }
  0x1d   :  { %87 = vmatpush.msra.mxu1 %v34_v29 }
  0x1e   :  { %68 = vmatpush.msra.mxu0 %v17_v30 }
  0x1f   :  { %88 = vmatpush.msra.mxu1 %v33_v31 }
  0x20   :  { %69 = vmatpush.msra.mxu0 %v16_v32 }
  0x21   :  { %89 = vmatpush.msra.mxu1 %v32_v33  ;;  %70 = vmatmul.f32.vlgmr.msra.gmra.mxu0 %v14_v34 }
  0x22   :  { %90 = vmatmul.f32.vlgmr.msra.gmra.mxu1 %v15_v35 }
  0x78   :  { %v52_v36 = vpop.permute.xlu0 %51 }
  0x9e   :  { %v71_v37 = vpop.f32.mrf.mxu0 }
  0x9f   :  { %v91_v38 = vpop.f32.mrf.mxu1  ;;  %v72_v39 = vadd.f32 %v71_v37, %v52_v36 }
  0xa1   :  { %v92_v40 = vadd.f32 %v91_v38, %v72_v39 }
  0xa3   :  { %v94_v41 = vmax.f32 %v92_v40, 0.0 }
  0xa5   :  { %95 = vst [vmem:[%s234_s3] sm:$0xff] %v94_v41 }

// kernel: forward.5
= control target key start
LH: loop header
LB: loop body
LE: loop exit
PB: predicated region body
PF: predicated region fallthrough
CT: control target
= control target key end

     0   :  { %12 = vsyncpa [#allocation4], 0  ;;  %s1314_s24 = smov 0   ;;  %s1479_s0 = inlined_call_operand.vmem [shape: bf16[4,1536], index: 0, kind: input, shape index: {}]   ;;  %s1480_s1 = inlined_call_operand.vmem [shape: bf16[1536,128], index: 1, kind: input, shape index: {}]   ;;  %s1481_s2 = inlined_call_operand.vmem [shape: f32[2,128], index: 2, kind: input, shape index: {}]   ;;  %s1482_s3 = inlined_call_operand.vmem [shape: f32[128,64], index: 3, kind: input, shape index: {}]   ;;  %s1483_s4 = inlined_call_operand.vmem [shape: f32[1,64], index: 4, kind: input, shape index: {}]   ;;  %s1484_s5 = inlined_call_operand.vmem [shape: f32[64,10], index: 5, kind: input, shape index: {}]   ;;  %s1485_s6 = inlined_call_operand.vmem [shape: f32[1,10], index: 6, kind: input, shape index: {}]   ;;  %s1486_s7 = inlined_call_operand.hbm [shape: f32[2,10], index: 7, kind: output, shape index: {}]  }
   0x1 LB: > { %s1320_s25 = sadd.s32 4294967295, %s1269_s24   ;;  %p958_p0 = scmp.ge.s32.totalorder %s1269_s24, 1  ;;  %s1269_s24 = sphi %s1314_s24, %s18_s24  }
   0x2   : > { %p245_p1 = scmp.lt.s32.totalorder %s1269_s24, 3 }
   0x4   : > { %p246_p2 = pnand %p958_p0, %p245_p1 }
   0x5   : > { %s277_s26 = smul.u32 (!%p246_p2), 6, %s1320_s25  ;;  %p961_p5 = scmp.ne.s32.totalorder (!%p246_p2), %s1320_s25, 0 }
   0x6   : > { %249 = sbr.rel (%p246_p2) target bundleno = 782 (0x30e), region = 48 }
   0x7   : > { %s283_s27 = smul.u32 (!%p246_p2), 96, %s1320_s25  ;;  %p278_p3 = scmp.lt.s32.totalorder (!%p246_p2), %s277_s26, 11 }
   0x9   : > { %p284_p4 = scmp.lt.s32.totalorder (!%p246_p2), %s283_s27, 191 }
   0xb   : > { %s1488_s26 = smov (!%p278_p3, %s277_s26), 11  ;;  %s1490_s27 = smov (!%p284_p4, %s283_s27), 191 }
   0xc   : > { %s959_s28 = sshll.u32 %s1488_s26, 1  ;;  %s960_s9 = sshll.u32 %s1490_s27, 2 }
   0xd   : > { %s1329_s8 = scalar_lea.vmem %s1479_s0, %s959_s28  ;;  %s1334_s12 = scalar_lea.vmem %s1480_s1, %s960_s9 }
   0xe   : > { %292 = sbr.rel (%p961_p5) target bundleno = 21 (0x15), region = 52 }
  0x13   : > { %v1271_v0 = vmov 0.0  }
  0x14   : > { %293 = vst [vmem:[#allocation2] sm:$0xf] %v1271_v0 }
  0x15 PF: > { %v1167_v1 = vld [vmem:[%s1334_s12 + $0x38] sm:$0xff]  ;;  %v1166_v3 = vld [vmem:[%s1334_s12 + $0x30] sm:$0xff]  ;;  %v1165_v9 = vld [vmem:[%s1334_s12 + $0x28] sm:$0xff]  ;;  %p1154_p6 = scmp.ne.s32.totalorder %s1320_s25, 1 }
  0x16   : > { %v1175_v2 = vld [vmem:[%s1334_s12 + $0x78] sm:$0xff]  ;;  %698 = vmatpush.bf16.msra.mxu0 %v1167_v1  ;;  %v1174_v4 = vld [vmem:[%s1334_s12 + $0x70] sm:$0xff]  ;;  %v1173_v10 = vld [vmem:[%s1334_s12 + $0x68] sm:$0xff] }
  0x17   : > { %711 = vmatpush.bf16.msra.mxu1 %v1175_v2  ;;  %v1183_v5 = vld [vmem:[%s1334_s12 + $0xb8] sm:$0xff]  ;;  %v1182_v7 = vld [vmem:[%s1334_s12 + $0xb0] sm:$0xff]  ;;  %v1181_v11 = vld [vmem:[%s1334_s12 + $0xa8] sm:$0xff] }
  0x18   : > { %v1191_v6 = vld [vmem:[%s1334_s12 + $0xf8] sm:$0xff]  ;;  %724 = vmatpush.bf16.msra.mxu2 %v1183_v5  ;;  %v1190_v8 = vld [vmem:[%s1334_s12 + $0xf0] sm:$0xff]  ;;  %v1189_v12 = vld [vmem:[%s1334_s12 + $0xe8] sm:$0xff] }
  0x19   : > { %737 = vmatpush.bf16.msra.mxu3 %v1191_v6  ;;  %v1164_v13 = vld [vmem:[%s1334_s12 + $0x20] sm:$0xff]  ;;  %v1163_v18 = vld [vmem:[%s1334_s12 + $0x18] sm:$0xff]  ;;  %v1162_v22 = vld [vmem:[%s1334_s12 + $0x10] sm:$0xff] }
  0x1a   : > { %699 = vmatpush.bf16.msra.mxu0 %v1166_v3  ;;  %v1172_v14 = vld [vmem:[%s1334_s12 + $0x60] sm:$0xff]  ;;  %v1171_v19 = vld [vmem:[%s1334_s12 + $0x58] sm:$0xff]  ;;  %v1170_v23 = vld [vmem:[%s1334_s12 + $0x50] sm:$0xff] }
  0x1b   : > { %712 = vmatpush.bf16.msra.mxu1 %v1174_v4  ;;  %v295_v15 = vld [vmem:[%s1329_s8] sm:$0xff]  ;;  %v1179_v20 = vld [vmem:[%s1334_s12 + $0x98] sm:$0xff]  ;;  %v1178_v24 = vld [vmem:[%s1334_s12 + $0x90] sm:$0xff] }
  0x1c   : > { %725 = vmatpush.bf16.msra.mxu2 %v1182_v7  ;;  %v1180_v16 = vld [vmem:[%s1334_s12 + $0xa0] sm:$0xff]  ;;  %394 = vst [vmem:[#allocation1] ss:$4 sm:$0xff] %v295_v15  ;;  %v1187_v21 = vld [vmem:[%s1334_s12 + $0xd8] sm:$0xff]  ;;  %v1186_v25 = vld [vmem:[%s1334_s12 + $0xd0] sm:$0xff] }
  0x1d   : > { %738 = vmatpush.bf16.msra.mxu3 %v1190_v8  ;;  %v1188_v17 = vld [vmem:[%s1334_s12 + $0xe0] sm:$0xff]  ;;  %v296_v26 = vld [vmem:[%s1329_s8 + $0x8] sm:$0xf]  ;;  %v1199_v33 = vld [vmem:[%s1334_s12 + $0x138] sm:$0xff]  ;;  %s1272_s8 = smov (!%p1154_p6), 64  }
  0x1e   : > { %700 = vmatpush.bf16.msra.mxu0 %v1165_v9  ;;  %v1161_v27 = vld [vmem:[%s1334_s12 + $0x8] sm:$0xff]  ;;  %397 = vst [vmem:[#allocation1 + $0x20] ss:$4 sm:$0xff] %v296_v26  ;;  %v1160_v31 = vld [vmem:[%s1334_s12] sm:$0xff]  ;;  %v1207_v34 = vld [vmem:[%s1334_s12 + $0x178] sm:$0xff] }
  0x1f   : > { %713 = vmatpush.bf16.msra.mxu1 %v1173_v10  ;;  %v1169_v28 = vld [vmem:[%s1334_s12 + $0x48] sm:$0xff]  ;;  %v1168_v32 = vld [vmem:[%s1334_s12 + $0x40] sm:$0xff]  ;;  %v1198_v39 = vld [vmem:[%s1334_s12 + $0x130] sm:$0xff] }
  0x20   : > { %726 = vmatpush.bf16.msra.mxu2 %v1181_v11  ;;  %v1177_v29 = vld [vmem:[%s1334_s12 + $0x88] sm:$0xff]  ;;  %v1176_v35 = vld [vmem:[%s1334_s12 + $0x80] sm:$0xff]  ;;  %v1206_v40 = vld [vmem:[%s1334_s12 + $0x170] sm:$0xff] }
  0x21   : > { %739 = vmatpush.bf16.msra.mxu3 %v1189_v12  ;;  %v1185_v30 = vld [vmem:[%s1334_s12 + $0xc8] sm:$0xff]  ;;  %v1184_v36 = vld [vmem:[%s1334_s12 + $0xc0] sm:$0xff]  ;;  %v1195_v47 = vld [vmem:[%s1334_s12 + $0x118] sm:$0xff] }
  0x22   : > { %701 = vmatpush.bf16.msra.mxu0 %v1164_v13  ;;  %v1197_v43 = vld [vmem:[%s1334_s12 + $0x128] sm:$0xff]  ;;  %v1196_v45 = vld [vmem:[%s1334_s12 + $0x120] sm:$0xff]  ;;  %v1203_v48 = vld [vmem:[%s1334_s12 + $0x158] sm:$0xff] }
  0x23   : > { %714 = vmatpush.bf16.msra.mxu1 %v1172_v14  ;;  %v398_v37 = vld.sshfl [vmem:[#allocation1] sm:$0xff pattern:$0x73625140]  ;;  %v399_v38 = vld.sshfl [vmem:[#allocation1 + $0x8] sm:$0xff pattern:$0x73625140] }
  0x24   : > { %727 = vmatpush.bf16.msra.mxu2 %v1180_v16  ;;  %v400_v41 = vld.sshfl [vmem:[#allocation1 + $0x10] sm:$0xff pattern:$0x73625140]  ;;  %v401_v42 = vld.sshfl [vmem:[#allocation1 + $0x18] sm:$0xff pattern:$0x73625140] }
  0x25   : > { %740 = vmatpush.bf16.msra.mxu3 %v1188_v17  ;;  %v1205_v44 = vld [vmem:[%s1334_s12 + $0x168] sm:$0xff]  ;;  %v1204_v46 = vld [vmem:[%s1334_s12 + $0x160] sm:$0xff]  ;;  %v1194_v49 = vld [vmem:[%s1334_s12 + $0x110] sm:$0xff] }
  0x26   : > { %702 = vmatpush.bf16.msra.mxu0 %v1163_v18  ;;  %v1202_v50 = vld [vmem:[%s1334_s12 + $0x150] sm:$0xff]  ;;  %v1193_v51 = vld [vmem:[%s1334_s12 + $0x108] sm:$0xff]  ;;  %v1192_v53 = vld [vmem:[%s1334_s12 + $0x100] sm:$0xff] }
  0x27   : > { %715 = vmatpush.bf16.msra.mxu1 %v1171_v19  ;;  %v1201_v52 = vld [vmem:[%s1334_s12 + $0x148] sm:$0xff]  ;;  %v1200_v54 = vld [vmem:[%s1334_s12 + $0x140] sm:$0xff] }
  0x28   : > { %728 = vmatpush.bf16.msra.mxu2 %v1179_v20  ;;  %v402_v55 = vld.sshfl [vmem:[#allocation1 + $0x20] sm:$0xff pattern:$0x73625140]  ;;  %v403_v56 = vld.sshfl [vmem:[#allocation1 + $0x28] sm:$0xff pattern:$0x73625140] }
  0x29   : > { %741 = vmatpush.bf16.msra.mxu3 %v1187_v21  ;;  %v294_v7 = vld [vmem:[#allocation2] sm:$0xf] }
  0x2a   : > { %703 = vmatpush.bf16.msra.mxu0 %v1162_v22 }
  0x2b   : > { %716 = vmatpush.bf16.msra.mxu1 %v1170_v23 }
  0x2c   : > { %729 = vmatpush.bf16.msra.mxu2 %v1178_v24 }
  0x2d   : > { %742 = vmatpush.bf16.msra.mxu3 %v1186_v25 }
  0x2e   : > { %704 = vmatpush.bf16.msra.mxu0 %v1161_v27 }
  0x2f   : > { %717 = vmatpush.bf16.msra.mxu1 %v1169_v28 }
  0x30   : > { %730 = vmatpush.bf16.msra.mxu2 %v1177_v29 }
  0x31   : > { %743 = vmatpush.bf16.msra.mxu3 %v1185_v30 }
  0x32   : > { %705 = vmatpush.bf16.msra.mxu0 %v1160_v31 }
  0x33   : > { %718 = vmatpush.bf16.msra.mxu1 %v1168_v32 }
  0x34   : > { %731 = vmatpush.bf16.msra.mxu2 %v1176_v35 }
  0x35   : > { %744 = vmatpush.bf16.msra.mxu3 %v1184_v36  ;;  %706 = vmatmul.bf16.vlgmr.msra.gmra.mxu0 %v398_v37 }
  0x36   : > { %750 = vmatpush.bf16.msrb.mxu0 %v1199_v33  ;;  %719 = vmatmul.bf16.vlgmr.msra.gmra.mxu1 %v399_v38 }
  0x37   : > { %763 = vmatpush.bf16.msrb.mxu1 %v1207_v34  ;;  %732 = vmatmul.bf16.vlgmr.msra.gmra.mxu2 %v400_v41 }
  0x38   : > { %745 = vmatmul.bf16.vlgmr.msra.gmra.mxu3 %v401_v42 }
  0x3a   : > { %751 = vmatpush.bf16.msrb.mxu0 %v1198_v39 }
  0x3b   : > { %764 = vmatpush.bf16.msrb.mxu1 %v1206_v40 }
  0x3e   : > { %752 = vmatpush.bf16.msrb.mxu0 %v1197_v43 }
  0x3f   : > { %765 = vmatpush.bf16.msrb.mxu1 %v1205_v44 }
  0x42   : > { %753 = vmatpush.bf16.msrb.mxu0 %v1196_v45 }
  0x43   : > { %766 = vmatpush.bf16.msrb.mxu1 %v1204_v46 }
  0x46   : > { %754 = vmatpush.bf16.msrb.mxu0 %v1195_v47 }
  0x47   : > { %767 = vmatpush.bf16.msrb.mxu1 %v1203_v48 }
  0x4a   : > { %755 = vmatpush.bf16.msrb.mxu0 %v1194_v49 }
  0x4b   : > { %768 = vmatpush.bf16.msrb.mxu1 %v1202_v50 }
  0x4e   : > { %756 = vmatpush.bf16.msrb.mxu0 %v1193_v51 }
  0x4f   : > { %769 = vmatpush.bf16.msrb.mxu1 %v1201_v52 }
  0x52   : > { %757 = vmatpush.bf16.msrb.mxu0 %v1192_v53 }
  0x53   : > { %770 = vmatpush.bf16.msrb.mxu1 %v1200_v54 }
  0x55   : > { %758 = vmatmul.bf16.vlgmr.msrb.gmra.mxu0 %v402_v55 }
  0x56   : > { %771 = vmatmul.bf16.vlgmr.msrb.gmra.mxu1 %v403_v56 }
  0xb2   : > { %v707_v57 = vpop.f32.mrf.mxu0 }
  0xb3   : > { %v720_v58 = vpop.f32.mrf.mxu1 }
  0xb4   : > { %v721_v1 = vadd.f32 %v720_v58, %v707_v57 }
  0xba   : > { %v709_v59 = vpop.f32.mrf.mxu0  ;;  %v733_v61 = vpop.f32.mrf.mxu2 }
  0xbb   : > { %v722_v60 = vpop.f32.mrf.mxu1  ;;  %v746_v62 = vpop.f32.mrf.mxu3  ;;  %v734_v2 = vadd.f32 %v733_v61, %v721_v1 }
  0xbd   : > { %v747_v3 = vadd.f32 %v746_v62, %v734_v2 }
  0xc2   : > { %v735_v63 = vpop.f32.mrf.mxu2 }
  0xc3   : > { %v748_v0 = vpop.f32.mrf.mxu3 }
  0xd2   : > { %v759_v4 = vpop.f32.mrf.mxu0 }
  0xd3   : > { %v772_v5 = vpop.f32.mrf.mxu1  ;;  %v760_v6 = vadd.f32 %v759_v4, %v747_v3 }
  0xd5   : > { %v773_v8 = vadd.f32 %v772_v5, %v760_v6 }
  0xd7   : > { %v776_v9 = vadd.f32 %v773_v8, %v294_v7  ;;  %781 = sbr.rel (%p1154_p6) target bundleno = 777 (0x309), region = 56 }
  0xd9   : > { %777 = vst [vmem:[#allocation2] sm:$0xf] %v776_v9 }
  0xda   : > { %v761_v10 = vpop.f32.mrf.mxu0 }
  0xdb   : > { %v774_v11 = vpop.f32.mrf.mxu1 }
  0xdc   : > { %v805_v12 = vld [vmem:[%s1482_s3 + $0x78] sm:$0xff]  ;;  %v804_v13 = vld [vmem:[%s1482_s3 + $0x70] sm:$0xff]  ;;  %v803_v14 = vld [vmem:[%s1482_s3 + $0x68] sm:$0xff]  ;;  %vm845_vm0 = vcmask 523264   ;;  %vm869_vm1 = vcmask 74752  }
  0xdd   : > { %806 = vmatpush.msra.mxu0 %v805_v12  ;;  %v802_v15 = vld [vmem:[%s1482_s3 + $0x60] sm:$0xff]  ;;  %v801_v17 = vld [vmem:[%s1482_s3 + $0x58] sm:$0xff]  ;;  %v839_v20 = vld [vmem:[%s1484_s5 + $0x30] sm:$0xff] }
  0xde   : > { %v840_v19 = vld [vmem:[%s1484_s5 + $0x38] sm:$0xff]  ;;  %v800_v21 = vld [vmem:[%s1482_s3 + $0x50] sm:$0xff]  ;;  %v838_v22 = vld [vmem:[%s1484_s5 + $0x28] sm:$0xff] }
  0xdf   : > { %807 = vmatpush.msra.mxu0 %v804_v13  ;;  %857 = vmatpush.msra.mxu1 %v840_v19  ;;  %v799_v23 = vld [vmem:[%s1482_s3 + $0x48] sm:$0xff]  ;;  %v837_v24 = vld [vmem:[%s1484_s5 + $0x20] sm:$0xff]  ;;  %v797_v26 = vld [vmem:[%s1482_s3 + $0x38] sm:$0xff] }
  0xe0   : > { %v782_v16 = vld [vmem:[#allocation2] sm:$0xf]  ;;  %v798_v25 = vld [vmem:[%s1482_s3 + $0x40] sm:$0xff]  ;;  %v796_v27 = vld [vmem:[%s1482_s3 + $0x30] sm:$0xff] }
  0xe1   : > { %808 = vmatpush.msra.mxu0 %v803_v14  ;;  %v784_v18 = vrot.slane %v782_v16, 2  ;;  %858 = vmatpush.msra.mxu1 %v839_v20  ;;  %v795_v28 = vld [vmem:[%s1482_s3 + $0x28] sm:$0xff]  ;;  %v794_v29 = vld [vmem:[%s1482_s3 + $0x20] sm:$0xff]  ;;  %v793_v30 = vld [vmem:[%s1482_s3 + $0x18] sm:$0xff] }
  0xe2   : > { %v792_v31 = vld [vmem:[%s1482_s3 + $0x10] sm:$0xff]  ;;  %v791_v32 = vld [vmem:[%s1482_s3 + $0x8] sm:$0xff]  ;;  %v790_v33 = vld [vmem:[%s1482_s3] sm:$0xff] }
  0xe3   : > { %809 = vmatpush.msra.mxu0 %v802_v15  ;;  %785 = vrot.lane.b32.xlu0 %v784_v18, %s1272_s8  ;;  %v789_v34 = vld [vmem:[%s1481_s2] sm:$0x3]  ;;  %v836_v35 = vld [vmem:[%s1484_s5 + $0x18] sm:$0xff]  ;;  %v835_v36 = vld [vmem:[%s1484_s5 + $0x10] sm:$0xff] }
  0xe4   : > { %859 = vmatpush.msra.mxu1 %v838_v22  ;;  %v834_v37 = vld [vmem:[%s1484_s5 + $0x8] sm:$0xff]  ;;  %v833_v38 = vld [vmem:[%s1484_s5] sm:$0xff] }
  0xe5   : > { %810 = vmatpush.msra.mxu0 %v801_v17  ;;  %v1225_v41 = vld [vmem:[%s1483_s4] ss:$0 sm:$0xff] }
  0xe6   : > { %860 = vmatpush.msra.mxu1 %v837_v24  ;;  %v1226_v46 = vld [vmem:[%s1485_s6] ss:$0 sm:$0xff] }
  0xe7   : > { %811 = vmatpush.msra.mxu0 %v800_v21 }
  0xe8   : > { %861 = vmatpush.msra.mxu1 %v836_v35 }
  0xe9   : > { %812 = vmatpush.msra.mxu0 %v799_v23 }
  0xea   : > { %862 = vmatpush.msra.mxu1 %v835_v36 }
  0xeb   : > { %813 = vmatpush.msra.mxu0 %v798_v25 }
  0xec   : > { %863 = vmatpush.msra.mxu1 %v834_v37 }
  0xed   : > { %814 = vmatpush.msra.mxu0 %v797_v26 }
  0xee   : > { %864 = vmatpush.msra.mxu1 %v833_v38 }
  0xef   : > { %815 = vmatpush.msra.mxu0 %v796_v27 }
  0xf1   : > { %816 = vmatpush.msra.mxu0 %v795_v28 }
  0xf3   : > { %817 = vmatpush.msra.mxu0 %v794_v29 }
  0xf5   : > { %818 = vmatpush.msra.mxu0 %v793_v30 }
  0xf7   : > { %819 = vmatpush.msra.mxu0 %v792_v31 }
  0xf9   : > { %820 = vmatpush.msra.mxu0 %v791_v32 }
  0xfb   : > { %821 = vmatpush.msra.mxu0 %v790_v33 }
  0xfc   : > { %822 = vmatmul.f32.vlgmr.msra.gmra.mxu0 %v789_v34 }
 0x155   : > { %v786_v39 = vpop.permute.xlu0 %785 }
 0x156   : > { %v788_v40 = vadd.f32 %v786_v39, %v782_v16 }
 0x179   : > { %v823_v42 = vpop.f32.mrf.mxu0 }
 0x17a   : > { %v826_v43 = vadd.f32 %v823_v42, %v788_v40 }
 0x17c   : > { %v831_v44 = vadd.f32 %v1225_v41, %v826_v43 }
 0x17e   : > { %v832_v45 = vmax.f32 %v831_v44, 0.0 }
 0x180   : > { %1155 = vmatmul.msk.f32.vlgmr.msra.gmra.mxu1 %vm845_vm0, %v832_v45 }
 0x1fd   : > { %v866_v47 = vpop.f32.mrf.mxu1 }
 0x1fe   : > { %v867_v48 = vadd.f32 %v1226_v46, %v866_v47 }
 0x200   : > { %v870_v49 = vsel %vm869_vm1, %v867_v48, -inf }
 0x201   : > { %871 = vmax.xlane.f32.xlu0 %v870_v49 }
 0x274   : > { %v872_v50 = vpop.xlane.xlu0 %871 }
 0x275   : > { %v873_v51 = vsub.f32 %v867_v48, %v872_v50 }
 0x277   : > { %v874_v52 = vmul.f32 1.442695, %v873_v51 }
 0x279   : > { %1227 = vpow2.f32 %v874_v52 }
 0x27f   : > { %v1228_v53 = vpop.eup %1227 }
 0x280   : > { %v876_v54 = vsel %vm869_vm1, %v1228_v53, 0.0 }
 0x281   : > { %877 = vadd.xlane.f32.xlu1 %v876_v54 }
 0x2f4   : > { %v878_v55 = vpop.xlane.xlu1 %877 }
 0x2f5   : > { %1229 = vrcp.f32 %v878_v55  ;;  %v890_v59 = vand.u32 2147483648, %v878_v55  ;;  %v888_v61 = vand.u32 2147483647, %v878_v55  ;;  %vm884_vm3 = vweird.f32 %v878_v55 }
 0x2f7   : > { %v891_v63 = vor.u32 1.1754944e-38, %v890_v59  ;;  %vm889_vm5 = vcmp.eq.f32.partialorder %v888_v61, 8.507059e+37 }
 0x2fb   : > { %v1230_v56 = vpop.eup %1229 }
 0x2fc   : > { %v880_v57 = vmul.f32 %v1230_v56, %v878_v55  ;;  %vm885_vm2 = vweird.f32 %v1230_v56 }
 0x2fd   : > { %vm886_vm4 = vmor %vm884_vm3, %vm885_vm2 }
 0x2fe   : > { %v881_v58 = vsub.f32 1.0, %v880_v57 }
 0x300   : > { %v882_v60 = vmul.f32 %v1230_v56, %v881_v58 }
 0x302   : > { %v883_v62 = vadd.f32 %v1230_v56, %v882_v60 }
 0x304   : > { %v887_v0 = vsel %vm886_vm4, %v1230_v56, %v883_v62 }
 0x305   : > { %v892_v1 = vsel %vm889_vm5, %v891_v63, %v887_v0 }
 0x306   : > { %v893_v2 = vmul.f32 %v1228_v53, %v892_v1 }
 0x308   : > { %894 = vst.msk [vmem:[#allocation3] sm:$0x3] %vm869_vm1, %v893_v2 }
 0x309 PF: > { %p1212_p7 = scmp.eq.s32.totalorder %s1320_s25, 1  ;;  %s1273_s28 = smov [#allocation3]  }
 0x30a   : > { %s901_s29 = sshll.u32 %s1273_s28, 4  ;;  %s903_s9 = sshll.u32 %s1486_s7, 4  ;;  %s902_s29 = int_to_ptr.vmem [resolvable:$true] %s901_s29  ;;  %s904_s9 = int_to_ptr.hbm [resolvable:$true] %s903_s9 }
 0x30b   : > { %1209 = dma.vmem_to_hbm [thread:$0]  (%p1212_p7), %s902_s29, 32, %s904_s9, [#allocation4]  }
 0x30c   : > { %1264 = dma.done.wait (%p1212_p7), [#allocation4], 32  }
 0x30d   : > { %1266 = vsyncadd (%p1212_p7), [#allocation4], 4294967264 }
 0x30e PF: > { %s18_s24 = sadd.s32 1, %s1269_s24  }
 0x30f   : > { %p15_p8 = scmp.ge.s32.totalorder %s18_s24, 4  }
 0x311   :  { %17 = sbr.rel (!%p15_p8) target bundleno = 1 (0x1), region = 87 }
 0x316   :  { %917 = vsyncpa [#allocation4], 1 }
 0x317   :  { %919 = vsyncpa [#allocation4 + $0x1], 1 }

</bundles_post_ra>
